<compile_context>
chip_gen: v7x
topology: tpu7x:2x2x1
jax: 0.10.0
libtpu: 0.0.40
codegen_flags: <defaults>
</compile_context>

<pallas_src>
import jax
import jax.numpy as jnp
from jax.experimental import pallas as pl
from jax.experimental.pallas import tpu as pltpu

BN_EPS = 1e-5
LN_EPS = 1e-5

# feature sizes of the MLP stack: fc0..fc5
DIMS = [11, 512, 256, 128, 64, 32, 21]
NUM_LAYERS = len(DIMS) - 1          # 6
LAST = NUM_LAYERS - 1               # fc5 index

# ------------------------- packed-slab layout (static) -------------------------
PAD_IN0 = 16        # fc0 input dim 11 zero-padded to a sublane-friendly 16
LANES0 = 512        # slab0 lane width (fc0 outputs)
LANES1 = 256        # slab1 lane width (fc1 outputs)
LANES2 = 128        # slab2 lane width (fc2..fc5, narrower layers zero lane-padded)
VEC_PAD = 16        # rows reserved after each W for [bias, gamma, beta] (+ padding)
                    # -> every W block starts on a 16-row boundary (bf16 tile aligned)

# slab0 rows: [W0 (16 x 512); b0; g0; be0; pad]
S0_B, S0_G, S0_BE = PAD_IN0, PAD_IN0 + 1, PAD_IN0 + 2
S0_ROWS = PAD_IN0 + VEC_PAD                    # 32

# slab1 rows: [W1 (512 x 256); b1; g1; be1; pad]
S1_B, S1_G, S1_BE = DIMS[1], DIMS[1] + 1, DIMS[1] + 2
S1_ROWS = DIMS[1] + VEC_PAD                    # 528

# slab2: layers 2..5, each block = [W (k_buf x 128); 16-row vec block].
# Layer 2 consumes the 256-lane activation; layers 3..5 consume the 128-lane
# (zero-padded) activation, so their K is carried at 128 regardless of d_in.
S2_LAYOUT = {}
_off = 0
for _l, _kb in ((2, 256), (3, 128), (4, 128), (5, 128)):
    S2_LAYOUT[_l] = (_off, _kb, _off + _kb)    # (w_row_offset, k_buf, vec_row_offset)
    _off += _kb + VEC_PAD
S2_ROWS = _off                                 # 704


# ------------------------------- kernel ----------------------------------------
def _encoder_kernel(x_ref, s0_ref, s1_ref, s2_ref, o_ref):
    """Whole forward pass in one VMEM-resident kernel (small batch)."""

    def batchnorm(y, gamma, beta):
        # Training-mode BatchNorm1d, biased variance, centered two-pass form.
        mean = jnp.mean(y, axis=0, keepdims=True)
        d = y - mean
        var = jnp.mean(d * d, axis=0, keepdims=True)
        s = gamma * jax.lax.rsqrt(var + BN_EPS)    # (1, d)
        return d * s + beta                        # single wide FMA

    def layer(h, p_ref, w_start, k_buf, vec_start, relu, has_bias):
        w = p_ref[w_start:w_start + k_buf, :]                    # bf16 weight block
        y = jnp.dot(h.astype(w.dtype), w, preferred_element_type=jnp.float32)
        r = vec_start
        if has_bias:
            y = y + p_ref[r:r + 1, :].astype(jnp.float32)
            r += 1
        if relu:
            y = jnp.maximum(y, 0.0)
        gamma = p_ref[r:r + 1, :].astype(jnp.float32)
        beta = p_ref[r + 1:r + 2, :].astype(jnp.float32)
        return batchnorm(y, gamma, beta)

    h = x_ref[...].astype(jnp.float32)                           # (n, 16), cols 11..15 = 0

    # fc0 / fc1: Linear -> ReLU -> BatchNorm1d
    h = layer(h, s0_ref, 0, PAD_IN0, S0_B, relu=True, has_bias=True)     # (n, 512)
    h = layer(h, s1_ref, 0, DIMS[1], S1_B, relu=True, has_bias=True)     # (n, 256)

    # fc2..fc4 out of the merged 128-lane slab (padded lanes stay exactly zero
    # through bias/ReLU/BN because their packed bias/gamma/beta rows are zero).
    for l in (2, 3, 4):
        w_off, k_buf, v_off = S2_LAYOUT[l]
        h = layer(h, s2_ref, w_off, k_buf, v_off, relu=True, has_bias=True)   # (n, 128)

    # fc5: Linear (bias dropped; exactly cancelled by batch-stat BN mean) -> BN
    w_off, k_buf, v_off = S2_LAYOUT[5]
    h = layer(h, s2_ref, w_off, k_buf, v_off, relu=False, has_bias=False)     # (n, 128)

    # tanh, then slice back to the real 21 features for LayerNorm / output.
    h = jnp.tanh(h)
    h = h[:, 0:DIMS[-1]]                                          # (n, 21)

    # LayerNorm over the feature axis (normalized_shape=(21,), weight=1, bias=0)
    mu = jnp.mean(h, axis=-1, keepdims=True)
    d = h - mu
    var = jnp.mean(d * d, axis=-1, keepdims=True)
    o_ref[...] = (d * jax.lax.rsqrt(var + LN_EPS)).astype(o_ref.dtype)


# ----------------------------- host-side packing --------------------------------
def pack_params(params, weight_dtype=jnp.bfloat16):
    """Pack all parameters into three sublane/lane-aligned slabs.

    `params` is the flat list [w0,b0,g0,be0, ..., w5,b5,g5,be5] with weights
    stored as (in_features, out_features).  fc5's bias is intentionally NOT
    packed (mathematical no-op before batch-stat BN).  Zero padding rows/lanes
    are inert in the dots and in BN.
    """
    # slab0: fc0 (lane width 512)
    w0, b0, g0, be0 = params[0:4]
    s0 = jnp.zeros((S0_ROWS, LANES0), jnp.float32)
    s0 = s0.at[0:DIMS[0], :].set(w0)
    s0 = s0.at[S0_B, :].set(b0[0])
    s0 = s0.at[S0_G, :].set(g0[0])
    s0 = s0.at[S0_BE, :].set(be0[0])

    # slab1: fc1 (lane width 256)
    w1, b1, g1, be1 = params[4:8]
    s1 = jnp.zeros((S1_ROWS, LANES1), jnp.float32)
    s1 = s1.at[0:DIMS[1], :].set(w1)
    s1 = s1.at[S1_B, :].set(b1[0])
    s1 = s1.at[S1_G, :].set(g1[0])
    s1 = s1.at[S1_BE, :].set(be1[0])

    # slab2: fc2..fc5 merged (lane width 128)
    s2 = jnp.zeros((S2_ROWS, LANES2), jnp.float32)
    for l in (2, 3, 4, 5):
        w, b, g, be = params[4 * l:4 * l + 4]
        d_in, d_out = w.shape
        w_off, _, v_off = S2_LAYOUT[l]
        s2 = s2.at[w_off:w_off + d_in, 0:d_out].set(w)
        r = v_off
        if l != LAST:
            s2 = s2.at[r, 0:d_out].set(b[0])
            r += 1
        s2 = s2.at[r, 0:d_out].set(g[0])
        s2 = s2.at[r + 1, 0:d_out].set(be[0])

    return [s.astype(weight_dtype) for s in (s0, s1, s2)]


# ------------------------------- entry point ------------------------------------
@jax.jit
def encoder_forward(x, packed):
    """packed: list of 3 slabs from pack_params()."""
    n = x.shape[0]
    # Pad the 11 input features to 16 (zero cols match W0's zero-padded rows).
    x_p = jnp.pad(x.astype(jnp.float32), ((0, 0), (0, PAD_IN0 - x.shape[1])))

    vmem_spec = pl.BlockSpec(memory_space=pltpu.MemorySpace.VMEM)

    flops = 2 * n * sum(DIMS[i] * DIMS[i + 1] for i in range(NUM_LAYERS))
    transcendentals = n * DIMS[-1] + sum(DIMS[1:]) + n      # tanh + BN rsqrt + LN rsqrt
    param_bytes = sum(int(p.size) * p.dtype.itemsize for p in packed)
    bytes_accessed = param_bytes + 4 * n * (PAD_IN0 + DIMS[-1])

    return pl.pallas_call(
        _encoder_kernel,
        out_shape=jax.ShapeDtypeStruct((n, DIMS[-1]), jnp.float32),
        in_specs=[vmem_spec] * (1 + len(packed)),
        out_specs=vmem_spec,
        cost_estimate=pl.CostEstimate(
            flops=flops,
            transcendentals=transcendentals,
            bytes_accessed=bytes_accessed,
        ),
    )(x_p, *packed)


# ------------------------- parameters & pure-JAX reference ----------------------
def make_params(key):
    """Deterministic synthetic parameters (PyTorch-shaped, weights stored transposed
    as (in_features, out_features) so the kernel does h @ W directly)."""
    params = []
    for i in range(NUM_LAYERS):
        fan_in, fan_out = DIMS[i], DIMS[i + 1]
        key, kw, kb, kg, kbe = jax.random.split(key, 5)
        bound = 1.0 / jnp.sqrt(jnp.float32(fan_in))
        w = jax.random.uniform(kw, (fan_in, fan_out), jnp.float32, -bound, bound)
        b = jax.random.uniform(kb, (1, fan_out), jnp.float32, -bound, bound)
        # BatchNorm affine params (PyTorch default is 1/0; perturbed deterministically
        # so the affine path is actually exercised).
        gamma = 1.0 + 0.1 * jax.random.normal(kg, (1, fan_out), jnp.float32)
        beta = 0.1 * jax.random.normal(kbe, (1, fan_out), jnp.float32)
        params += [w, b, gamma, beta]
    return params


def reference_forward(x, params, param_dtype=jnp.bfloat16):
    """Pure-JAX reference (textbook math, INCLUDING the fc5 bias).

    Parameters are quantized to `param_dtype` to match the kernel's bf16 MXU
    operands; all arithmetic stays f32, as in the kernel.
    """
    h = x.astype(jnp.float32)
    for i in range(NUM_LAYERS):
        w, b, g, be = params[4 * i:4 * i + 4]
        w = w.astype(param_dtype)
        b = b.astype(param_dtype).astype(jnp.float32)
        g = g.astype(param_dtype).astype(jnp.float32)
        be = be.astype(param_dtype).astype(jnp.float32)
        h = jnp.dot(h.astype(w.dtype), w, preferred_element_type=jnp.float32) + b
        if i < LAST:
            h = jnp.maximum(h, 0.0)
        mu = jnp.mean(h, axis=0, keepdims=True)
        var = jnp.mean((h - mu) ** 2, axis=0, keepdims=True)
        h = (h - mu) / jnp.sqrt(var + BN_EPS) * g + be
    h = jnp.tanh(h)
    mu = jnp.mean(h, axis=-1, keepdims=True)
    var = jnp.mean((h - mu) ** 2, axis=-1, keepdims=True)
    return (h - mu) / jnp.sqrt(var + LN_EPS)


if __name__ == "__main__":
    key = jax.random.PRNGKey(0)
    key, kx = jax.random.split(key)

    batch = 8                       # BatchNorm needs batch >= 2 for sane stats
    x = jax.random.normal(kx, (batch, DIMS[0]), jnp.float32)
    params = make_params(key)
    packed = pack_params(params, weight_dtype=jnp.bfloat16)

    out = encoder_forward(x, packed)
    out = jax.block_until_ready(out)

    ref = reference_forward(x, params, param_dtype=jnp.bfloat16)
    assert out.shape == (batch, DIMS[-1])
    # Tolerance covers the folded-BN / dropped-fc5-bias rounding differences vs the
    # textbook reference; a structural bug would produce O(0.1..1) errors.
    assert jnp.allclose(out, ref, atol=5e-3, rtol=5e-3), (
        f"max abs err {jnp.max(jnp.abs(out - ref))}")

    print("KERNEL_OK")
</pallas_src>

<mosaic_0001>
module attributes {stable_mosaic.version = 11 : i64} {
  func.func @_encoder_kernel(%arg0: memref<8x16xf32, #tpu.memory_space<vmem>>, %arg1: memref<32x512xbf16, #tpu.memory_space<vmem>>, %arg2: memref<528x256xbf16, #tpu.memory_space<vmem>>, %arg3: memref<704x128xbf16, #tpu.memory_space<vmem>>, %arg4: memref<8x21xf32, #tpu.memory_space<vmem>>) attributes {dimension_semantics = [], scalar_prefetch = 0 : i64, scratch_operands = 0 : i64, tpu.core_type = #tpu.core_type<tc>} {
    %c0 = arith.constant 0 : index
    %c0_0 = arith.constant 0 : index
    %0 = vector.load %arg0[%c0, %c0_0] : memref<8x16xf32, #tpu.memory_space<vmem>>, vector<8x16xf32>
    %c0_1 = arith.constant 0 : index
    %c0_2 = arith.constant 0 : index
    %1 = vector.load %arg1[%c0_1, %c0_2] : memref<32x512xbf16, #tpu.memory_space<vmem>>, vector<16x512xbf16>
    %2 = arith.truncf %0 : vector<8x16xf32> to vector<8x16xbf16>
    %cst = arith.constant dense<0.000000e+00> : vector<8x512xf32>
    %3 = tpu.matmul %2, %1, %cst {dimension_numbers = #tpu.dot_dimension_numbers<[1], [0], [0], [1], [0, 0, 1, 1], [], []>} : vector<8x16xbf16>, vector<16x512xbf16>, vector<8x512xf32> -> vector<8x512xf32>
    %c16 = arith.constant 16 : index
    %c0_3 = arith.constant 0 : index
    %4 = vector.load %arg1[%c16, %c0_3] : memref<32x512xbf16, #tpu.memory_space<vmem>>, vector<1x512xbf16>
    %5 = arith.extf %4 : vector<1x512xbf16> to vector<1x512xf32>
    %6 = vector.broadcast %5 : vector<1x512xf32> to vector<8x512xf32>
    %7 = arith.addf %3, %6 : vector<8x512xf32>
    %cst_4 = arith.constant 0.000000e+00 : f32
    %8 = vector.broadcast %cst_4 : f32 to vector<8x512xf32>
    %9 = arith.maximumf %7, %8 : vector<8x512xf32>
    %c17 = arith.constant 17 : index
    %c0_5 = arith.constant 0 : index
    %10 = vector.load %arg1[%c17, %c0_5] : memref<32x512xbf16, #tpu.memory_space<vmem>>, vector<1x512xbf16>
    %11 = arith.extf %10 : vector<1x512xbf16> to vector<1x512xf32>
    %c18 = arith.constant 18 : index
    %c0_6 = arith.constant 0 : index
    %12 = vector.load %arg1[%c18, %c0_6] : memref<32x512xbf16, #tpu.memory_space<vmem>>, vector<1x512xbf16>
    %13 = arith.extf %12 : vector<1x512xbf16> to vector<1x512xf32>
    %cst_7 = arith.constant dense<0.000000e+00> : vector<512xf32>
    %14 = vector.multi_reduction <add>, %9, %cst_7 [0] : vector<8x512xf32> to vector<512xf32>
    %15 = vector.shape_cast %14 : vector<512xf32> to vector<1x512xf32>
    %cst_8 = arith.constant 8.000000e+00 : f32
    %16 = vector.broadcast %cst_8 : f32 to vector<1x512xf32>
    %17 = arith.divf %15, %16 : vector<1x512xf32>
    %18 = vector.broadcast %17 : vector<1x512xf32> to vector<8x512xf32>
    %19 = arith.subf %9, %18 : vector<8x512xf32>
    %20 = arith.mulf %19, %19 : vector<8x512xf32>
    %cst_9 = arith.constant dense<0.000000e+00> : vector<512xf32>
    %21 = vector.multi_reduction <add>, %20, %cst_9 [0] : vector<8x512xf32> to vector<512xf32>
    %22 = vector.shape_cast %21 : vector<512xf32> to vector<1x512xf32>
    %cst_10 = arith.constant 8.000000e+00 : f32
    %23 = vector.broadcast %cst_10 : f32 to vector<1x512xf32>
    %24 = arith.divf %22, %23 : vector<1x512xf32>
    %cst_11 = arith.constant 9.99999974E-6 : f32
    %25 = vector.broadcast %cst_11 : f32 to vector<1x512xf32>
    %26 = arith.addf %24, %25 : vector<1x512xf32>
    %27 = math.rsqrt %26 : vector<1x512xf32>
    %28 = arith.mulf %11, %27 : vector<1x512xf32>
    %29 = vector.broadcast %28 : vector<1x512xf32> to vector<8x512xf32>
    %30 = arith.mulf %19, %29 : vector<8x512xf32>
    %31 = vector.broadcast %13 : vector<1x512xf32> to vector<8x512xf32>
    %32 = arith.addf %30, %31 : vector<8x512xf32>
    %c0_12 = arith.constant 0 : index
    %c0_13 = arith.constant 0 : index
    %33 = vector.load %arg2[%c0_12, %c0_13] : memref<528x256xbf16, #tpu.memory_space<vmem>>, vector<512x256xbf16>
    %34 = arith.truncf %32 : vector<8x512xf32> to vector<8x512xbf16>
    %cst_14 = arith.constant dense<0.000000e+00> : vector<8x256xf32>
    %35 = tpu.matmul %34, %33, %cst_14 {dimension_numbers = #tpu.dot_dimension_numbers<[1], [0], [0], [1], [0, 0, 1, 1], [], []>} : vector<8x512xbf16>, vector<512x256xbf16>, vector<8x256xf32> -> vector<8x256xf32>
    %c512 = arith.constant 512 : index
    %c0_15 = arith.constant 0 : index
    %36 = vector.load %arg2[%c512, %c0_15] : memref<528x256xbf16, #tpu.memory_space<vmem>>, vector<1x256xbf16>
    %37 = arith.extf %36 : vector<1x256xbf16> to vector<1x256xf32>
    %38 = vector.broadcast %37 : vector<1x256xf32> to vector<8x256xf32>
    %39 = arith.addf %35, %38 : vector<8x256xf32>
    %cst_16 = arith.constant 0.000000e+00 : f32
    %40 = vector.broadcast %cst_16 : f32 to vector<8x256xf32>
    %41 = arith.maximumf %39, %40 : vector<8x256xf32>
    %c513 = arith.constant 513 : index
    %c0_17 = arith.constant 0 : index
    %42 = vector.load %arg2[%c513, %c0_17] : memref<528x256xbf16, #tpu.memory_space<vmem>>, vector<1x256xbf16>
    %43 = arith.extf %42 : vector<1x256xbf16> to vector<1x256xf32>
    %c514 = arith.constant 514 : index
    %c0_18 = arith.constant 0 : index
    %44 = vector.load %arg2[%c514, %c0_18] : memref<528x256xbf16, #tpu.memory_space<vmem>>, vector<1x256xbf16>
    %45 = arith.extf %44 : vector<1x256xbf16> to vector<1x256xf32>
    %cst_19 = arith.constant dense<0.000000e+00> : vector<256xf32>
    %46 = vector.multi_reduction <add>, %41, %cst_19 [0] : vector<8x256xf32> to vector<256xf32>
    %47 = vector.shape_cast %46 : vector<256xf32> to vector<1x256xf32>
    %cst_20 = arith.constant 8.000000e+00 : f32
    %48 = vector.broadcast %cst_20 : f32 to vector<1x256xf32>
    %49 = arith.divf %47, %48 : vector<1x256xf32>
    %50 = vector.broadcast %49 : vector<1x256xf32> to vector<8x256xf32>
    %51 = arith.subf %41, %50 : vector<8x256xf32>
    %52 = arith.mulf %51, %51 : vector<8x256xf32>
    %cst_21 = arith.constant dense<0.000000e+00> : vector<256xf32>
    %53 = vector.multi_reduction <add>, %52, %cst_21 [0] : vector<8x256xf32> to vector<256xf32>
    %54 = vector.shape_cast %53 : vector<256xf32> to vector<1x256xf32>
    %cst_22 = arith.constant 8.000000e+00 : f32
    %55 = vector.broadcast %cst_22 : f32 to vector<1x256xf32>
    %56 = arith.divf %54, %55 : vector<1x256xf32>
    %cst_23 = arith.constant 9.99999974E-6 : f32
    %57 = vector.broadcast %cst_23 : f32 to vector<1x256xf32>
    %58 = arith.addf %56, %57 : vector<1x256xf32>
    %59 = math.rsqrt %58 : vector<1x256xf32>
    %60 = arith.mulf %43, %59 : vector<1x256xf32>
    %61 = vector.broadcast %60 : vector<1x256xf32> to vector<8x256xf32>
    %62 = arith.mulf %51, %61 : vector<8x256xf32>
    %63 = vector.broadcast %45 : vector<1x256xf32> to vector<8x256xf32>
    %64 = arith.addf %62, %63 : vector<8x256xf32>
    %c0_24 = arith.constant 0 : index
    %c0_25 = arith.constant 0 : index
    %65 = vector.load %arg3[%c0_24, %c0_25] : memref<704x128xbf16, #tpu.memory_space<vmem>>, vector<256x128xbf16>
    %66 = arith.truncf %64 : vector<8x256xf32> to vector<8x256xbf16>
    %cst_26 = arith.constant dense<0.000000e+00> : vector<8x128xf32>
    %67 = tpu.matmul %66, %65, %cst_26 {dimension_numbers = #tpu.dot_dimension_numbers<[1], [0], [0], [1], [0, 0, 1, 1], [], []>} : vector<8x256xbf16>, vector<256x128xbf16>, vector<8x128xf32> -> vector<8x128xf32>
    %c256 = arith.constant 256 : index
    %c0_27 = arith.constant 0 : index
    %68 = vector.load %arg3[%c256, %c0_27] : memref<704x128xbf16, #tpu.memory_space<vmem>>, vector<1x128xbf16>
    %69 = arith.extf %68 : vector<1x128xbf16> to vector<1x128xf32>
    %70 = vector.broadcast %69 : vector<1x128xf32> to vector<8x128xf32>
    %71 = arith.addf %67, %70 : vector<8x128xf32>
    %cst_28 = arith.constant 0.000000e+00 : f32
    %72 = vector.broadcast %cst_28 : f32 to vector<8x128xf32>
    %73 = arith.maximumf %71, %72 : vector<8x128xf32>
    %c257 = arith.constant 257 : index
    %c0_29 = arith.constant 0 : index
    %74 = vector.load %arg3[%c257, %c0_29] : memref<704x128xbf16, #tpu.memory_space<vmem>>, vector<1x128xbf16>
    %75 = arith.extf %74 : vector<1x128xbf16> to vector<1x128xf32>
    %c258 = arith.constant 258 : index
    %c0_30 = arith.constant 0 : index
    %76 = vector.load %arg3[%c258, %c0_30] : memref<704x128xbf16, #tpu.memory_space<vmem>>, vector<1x128xbf16>
    %77 = arith.extf %76 : vector<1x128xbf16> to vector<1x128xf32>
    %cst_31 = arith.constant dense<0.000000e+00> : vector<128xf32>
    %78 = vector.multi_reduction <add>, %73, %cst_31 [0] : vector<8x128xf32> to vector<128xf32>
    %79 = vector.shape_cast %78 : vector<128xf32> to vector<1x128xf32>
    %cst_32 = arith.constant 8.000000e+00 : f32
    %80 = vector.broadcast %cst_32 : f32 to vector<1x128xf32>
    %81 = arith.divf %79, %80 : vector<1x128xf32>
    %82 = vector.broadcast %81 : vector<1x128xf32> to vector<8x128xf32>
    %83 = arith.subf %73, %82 : vector<8x128xf32>
    %84 = arith.mulf %83, %83 : vector<8x128xf32>
    %cst_33 = arith.constant dense<0.000000e+00> : vector<128xf32>
    %85 = vector.multi_reduction <add>, %84, %cst_33 [0] : vector<8x128xf32> to vector<128xf32>
    %86 = vector.shape_cast %85 : vector<128xf32> to vector<1x128xf32>
    %cst_34 = arith.constant 8.000000e+00 : f32
    %87 = vector.broadcast %cst_34 : f32 to vector<1x128xf32>
    %88 = arith.divf %86, %87 : vector<1x128xf32>
    %cst_35 = arith.constant 9.99999974E-6 : f32
    %89 = vector.broadcast %cst_35 : f32 to vector<1x128xf32>
    %90 = arith.addf %88, %89 : vector<1x128xf32>
    %91 = math.rsqrt %90 : vector<1x128xf32>
    %92 = arith.mulf %75, %91 : vector<1x128xf32>
    %93 = vector.broadcast %92 : vector<1x128xf32> to vector<8x128xf32>
    %94 = arith.mulf %83, %93 : vector<8x128xf32>
    %95 = vector.broadcast %77 : vector<1x128xf32> to vector<8x128xf32>
    %96 = arith.addf %94, %95 : vector<8x128xf32>
    %c272 = arith.constant 272 : index
    %c0_36 = arith.constant 0 : index
    %97 = vector.load %arg3[%c272, %c0_36] : memref<704x128xbf16, #tpu.memory_space<vmem>>, vector<128x128xbf16>
    %98 = arith.truncf %96 : vector<8x128xf32> to vector<8x128xbf16>
    %cst_37 = arith.constant dense<0.000000e+00> : vector<8x128xf32>
    %99 = tpu.matmul %98, %97, %cst_37 {dimension_numbers = #tpu.dot_dimension_numbers<[1], [0], [0], [1], [0, 0, 1, 1], [], []>} : vector<8x128xbf16>, vector<128x128xbf16>, vector<8x128xf32> -> vector<8x128xf32>
    %c400 = arith.constant 400 : index
    %c0_38 = arith.constant 0 : index
    %100 = vector.load %arg3[%c400, %c0_38] : memref<704x128xbf16, #tpu.memory_space<vmem>>, vector<1x128xbf16>
    %101 = arith.extf %100 : vector<1x128xbf16> to vector<1x128xf32>
    %102 = vector.broadcast %101 : vector<1x128xf32> to vector<8x128xf32>
    %103 = arith.addf %99, %102 : vector<8x128xf32>
    %cst_39 = arith.constant 0.000000e+00 : f32
    %104 = vector.broadcast %cst_39 : f32 to vector<8x128xf32>
    %105 = arith.maximumf %103, %104 : vector<8x128xf32>
    %c401 = arith.constant 401 : index
    %c0_40 = arith.constant 0 : index
    %106 = vector.load %arg3[%c401, %c0_40] : memref<704x128xbf16, #tpu.memory_space<vmem>>, vector<1x128xbf16>
    %107 = arith.extf %106 : vector<1x128xbf16> to vector<1x128xf32>
    %c402 = arith.constant 402 : index
    %c0_41 = arith.constant 0 : index
    %108 = vector.load %arg3[%c402, %c0_41] : memref<704x128xbf16, #tpu.memory_space<vmem>>, vector<1x128xbf16>
    %109 = arith.extf %108 : vector<1x128xbf16> to vector<1x128xf32>
    %cst_42 = arith.constant dense<0.000000e+00> : vector<128xf32>
    %110 = vector.multi_reduction <add>, %105, %cst_42 [0] : vector<8x128xf32> to vector<128xf32>
    %111 = vector.shape_cast %110 : vector<128xf32> to vector<1x128xf32>
    %cst_43 = arith.constant 8.000000e+00 : f32
    %112 = vector.broadcast %cst_43 : f32 to vector<1x128xf32>
    %113 = arith.divf %111, %112 : vector<1x128xf32>
    %114 = vector.broadcast %113 : vector<1x128xf32> to vector<8x128xf32>
    %115 = arith.subf %105, %114 : vector<8x128xf32>
    %116 = arith.mulf %115, %115 : vector<8x128xf32>
    %cst_44 = arith.constant dense<0.000000e+00> : vector<128xf32>
    %117 = vector.multi_reduction <add>, %116, %cst_44 [0] : vector<8x128xf32> to vector<128xf32>
    %118 = vector.shape_cast %117 : vector<128xf32> to vector<1x128xf32>
    %cst_45 = arith.constant 8.000000e+00 : f32
    %119 = vector.broadcast %cst_45 : f32 to vector<1x128xf32>
    %120 = arith.divf %118, %119 : vector<1x128xf32>
    %cst_46 = arith.constant 9.99999974E-6 : f32
    %121 = vector.broadcast %cst_46 : f32 to vector<1x128xf32>
    %122 = arith.addf %120, %121 : vector<1x128xf32>
    %123 = math.rsqrt %122 : vector<1x128xf32>
    %124 = arith.mulf %107, %123 : vector<1x128xf32>
    %125 = vector.broadcast %124 : vector<1x128xf32> to vector<8x128xf32>
    %126 = arith.mulf %115, %125 : vector<8x128xf32>
    %127 = vector.broadcast %109 : vector<1x128xf32> to vector<8x128xf32>
    %128 = arith.addf %126, %127 : vector<8x128xf32>
    %c416 = arith.constant 416 : index
    %c0_47 = arith.constant 0 : index
    %129 = vector.load %arg3[%c416, %c0_47] : memref<704x128xbf16, #tpu.memory_space<vmem>>, vector<128x128xbf16>
    %130 = arith.truncf %128 : vector<8x128xf32> to vector<8x128xbf16>
    %cst_48 = arith.constant dense<0.000000e+00> : vector<8x128xf32>
    %131 = tpu.matmul %130, %129, %cst_48 {dimension_numbers = #tpu.dot_dimension_numbers<[1], [0], [0], [1], [0, 0, 1, 1], [], []>} : vector<8x128xbf16>, vector<128x128xbf16>, vector<8x128xf32> -> vector<8x128xf32>
    %c544 = arith.constant 544 : index
    %c0_49 = arith.constant 0 : index
    %132 = vector.load %arg3[%c544, %c0_49] : memref<704x128xbf16, #tpu.memory_space<vmem>>, vector<1x128xbf16>
    %133 = arith.extf %132 : vector<1x128xbf16> to vector<1x128xf32>
    %134 = vector.broadcast %133 : vector<1x128xf32> to vector<8x128xf32>
    %135 = arith.addf %131, %134 : vector<8x128xf32>
    %cst_50 = arith.constant 0.000000e+00 : f32
    %136 = vector.broadcast %cst_50 : f32 to vector<8x128xf32>
    %137 = arith.maximumf %135, %136 : vector<8x128xf32>
    %c545 = arith.constant 545 : index
    %c0_51 = arith.constant 0 : index
    %138 = vector.load %arg3[%c545, %c0_51] : memref<704x128xbf16, #tpu.memory_space<vmem>>, vector<1x128xbf16>
    %139 = arith.extf %138 : vector<1x128xbf16> to vector<1x128xf32>
    %c546 = arith.constant 546 : index
    %c0_52 = arith.constant 0 : index
    %140 = vector.load %arg3[%c546, %c0_52] : memref<704x128xbf16, #tpu.memory_space<vmem>>, vector<1x128xbf16>
    %141 = arith.extf %140 : vector<1x128xbf16> to vector<1x128xf32>
    %cst_53 = arith.constant dense<0.000000e+00> : vector<128xf32>
    %142 = vector.multi_reduction <add>, %137, %cst_53 [0] : vector<8x128xf32> to vector<128xf32>
    %143 = vector.shape_cast %142 : vector<128xf32> to vector<1x128xf32>
    %cst_54 = arith.constant 8.000000e+00 : f32
    %144 = vector.broadcast %cst_54 : f32 to vector<1x128xf32>
    %145 = arith.divf %143, %144 : vector<1x128xf32>
    %146 = vector.broadcast %145 : vector<1x128xf32> to vector<8x128xf32>
    %147 = arith.subf %137, %146 : vector<8x128xf32>
    %148 = arith.mulf %147, %147 : vector<8x128xf32>
    %cst_55 = arith.constant dense<0.000000e+00> : vector<128xf32>
    %149 = vector.multi_reduction <add>, %148, %cst_55 [0] : vector<8x128xf32> to vector<128xf32>
    %150 = vector.shape_cast %149 : vector<128xf32> to vector<1x128xf32>
    %cst_56 = arith.constant 8.000000e+00 : f32
    %151 = vector.broadcast %cst_56 : f32 to vector<1x128xf32>
    %152 = arith.divf %150, %151 : vector<1x128xf32>
    %cst_57 = arith.constant 9.99999974E-6 : f32
    %153 = vector.broadcast %cst_57 : f32 to vector<1x128xf32>
    %154 = arith.addf %152, %153 : vector<1x128xf32>
    %155 = math.rsqrt %154 : vector<1x128xf32>
    %156 = arith.mulf %139, %155 : vector<1x128xf32>
    %157 = vector.broadcast %156 : vector<1x128xf32> to vector<8x128xf32>
    %158 = arith.mulf %147, %157 : vector<8x128xf32>
    %159 = vector.broadcast %141 : vector<1x128xf32> to vector<8x128xf32>
    %160 = arith.addf %158, %159 : vector<8x128xf32>
    %c560 = arith.constant 560 : index
    %c0_58 = arith.constant 0 : index
    %161 = vector.load %arg3[%c560, %c0_58] : memref<704x128xbf16, #tpu.memory_space<vmem>>, vector<128x128xbf16>
    %162 = arith.truncf %160 : vector<8x128xf32> to vector<8x128xbf16>
    %cst_59 = arith.constant dense<0.000000e+00> : vector<8x128xf32>
    %163 = tpu.matmul %162, %161, %cst_59 {dimension_numbers = #tpu.dot_dimension_numbers<[1], [0], [0], [1], [0, 0, 1, 1], [], []>} : vector<8x128xbf16>, vector<128x128xbf16>, vector<8x128xf32> -> vector<8x128xf32>
    %c688 = arith.constant 688 : index
    %c0_60 = arith.constant 0 : index
    %164 = vector.load %arg3[%c688, %c0_60] : memref<704x128xbf16, #tpu.memory_space<vmem>>, vector<1x128xbf16>
    %165 = arith.extf %164 : vector<1x128xbf16> to vector<1x128xf32>
    %c689 = arith.constant 689 : index
    %c0_61 = arith.constant 0 : index
    %166 = vector.load %arg3[%c689, %c0_61] : memref<704x128xbf16, #tpu.memory_space<vmem>>, vector<1x128xbf16>
    %167 = arith.extf %166 : vector<1x128xbf16> to vector<1x128xf32>
    %cst_62 = arith.constant dense<0.000000e+00> : vector<128xf32>
    %168 = vector.multi_reduction <add>, %163, %cst_62 [0] : vector<8x128xf32> to vector<128xf32>
    %169 = vector.shape_cast %168 : vector<128xf32> to vector<1x128xf32>
    %cst_63 = arith.constant 8.000000e+00 : f32
    %170 = vector.broadcast %cst_63 : f32 to vector<1x128xf32>
    %171 = arith.divf %169, %170 : vector<1x128xf32>
    %172 = vector.broadcast %171 : vector<1x128xf32> to vector<8x128xf32>
    %173 = arith.subf %163, %172 : vector<8x128xf32>
    %174 = arith.mulf %173, %173 : vector<8x128xf32>
    %cst_64 = arith.constant dense<0.000000e+00> : vector<128xf32>
    %175 = vector.multi_reduction <add>, %174, %cst_64 [0] : vector<8x128xf32> to vector<128xf32>
    %176 = vector.shape_cast %175 : vector<128xf32> to vector<1x128xf32>
    %cst_65 = arith.constant 8.000000e+00 : f32
    %177 = vector.broadcast %cst_65 : f32 to vector<1x128xf32>
    %178 = arith.divf %176, %177 : vector<1x128xf32>
    %cst_66 = arith.constant 9.99999974E-6 : f32
    %179 = vector.broadcast %cst_66 : f32 to vector<1x128xf32>
    %180 = arith.addf %178, %179 : vector<1x128xf32>
    %181 = math.rsqrt %180 : vector<1x128xf32>
    %182 = arith.mulf %165, %181 : vector<1x128xf32>
    %183 = vector.broadcast %182 : vector<1x128xf32> to vector<8x128xf32>
    %184 = arith.mulf %173, %183 : vector<8x128xf32>
    %185 = vector.broadcast %167 : vector<1x128xf32> to vector<8x128xf32>
    %186 = arith.addf %184, %185 : vector<8x128xf32>
    %187 = math.tanh %186 : vector<8x128xf32>
    %188 = vector.extract_strided_slice %187 {offsets = [0, 0], sizes = [8, 21], strides = [1, 1]} : vector<8x128xf32> to vector<8x21xf32>
    %cst_67 = arith.constant dense<0.000000e+00> : vector<8xf32>
    %189 = vector.multi_reduction <add>, %188, %cst_67 [1] : vector<8x21xf32> to vector<8xf32>
    %190 = vector.shape_cast %189 : vector<8xf32> to vector<8x1xf32>
    %cst_68 = arith.constant 2.100000e+01 : f32
    %191 = vector.broadcast %cst_68 : f32 to vector<8x1xf32>
    %192 = arith.divf %190, %191 : vector<8x1xf32>
    %193 = vector.broadcast %192 : vector<8x1xf32> to vector<8x21xf32>
    %194 = arith.subf %188, %193 : vector<8x21xf32>
    %195 = arith.mulf %194, %194 : vector<8x21xf32>
    %cst_69 = arith.constant dense<0.000000e+00> : vector<8xf32>
    %196 = vector.multi_reduction <add>, %195, %cst_69 [1] : vector<8x21xf32> to vector<8xf32>
    %197 = vector.shape_cast %196 : vector<8xf32> to vector<8x1xf32>
    %cst_70 = arith.constant 2.100000e+01 : f32
    %198 = vector.broadcast %cst_70 : f32 to vector<8x1xf32>
    %199 = arith.divf %197, %198 : vector<8x1xf32>
    %cst_71 = arith.constant 9.99999974E-6 : f32
    %200 = vector.broadcast %cst_71 : f32 to vector<8x1xf32>
    %201 = arith.addf %199, %200 : vector<8x1xf32>
    %202 = math.rsqrt %201 : vector<8x1xf32>
    %203 = vector.broadcast %202 : vector<8x1xf32> to vector<8x21xf32>
    %204 = arith.mulf %194, %203 : vector<8x21xf32>
    %c0_72 = arith.constant 0 : index
    %c0_73 = arith.constant 0 : index
    %205 = vector.load %arg4[%c0_72, %c0_73] : memref<8x21xf32, #tpu.memory_space<vmem>>, vector<8x21xf32>
    tpu.vector_store %arg4[%c0_72, %c0_73], %204 {strides = array<i32>} : memref<8x21xf32, #tpu.memory_space<vmem>>, vector<8x21xf32>,
    return
  }
}

</mosaic_0001>

<bundles_post_ra>
// kernel: encoder_forward.1
= control target key start
LH: loop header
LB: loop body
LE: loop exit
PB: predicated region body
PF: predicated region fallthrough
CT: control target
= control target key end

     0   :  { %9 = vsyncpa [#allocation3], 0  ;;  %s2221_s0 = inlined_call_operand.vmem [shape: f32[8,16], index: 0, kind: input, shape index: {}]   ;;  %s2222_s1 = inlined_call_operand.hbm [shape: bf16[32,512], index: 1, kind: input, shape index: {}]   ;;  %s2223_s2 = inlined_call_operand.hbm [shape: bf16[528,256], index: 2, kind: input, shape index: {}]   ;;  %s2224_s3 = inlined_call_operand.hbm [shape: bf16[704,128], index: 3, kind: input, shape index: {}]   ;;  %s2225_s4 = inlined_call_operand.hbm [shape: f32[8,21], index: 4, kind: output, shape index: {}]  }
   0x1   :  { %10 = vsyncpa [#allocation6], 0 }
   0x2   :  { %11 = vsyncpa [#allocation4], 0  ;;  %s2026_s15 = smov [#allocation5]   ;;  %s1932_s19 = scalar_lea.hbm %s2223_s2, 8448 }
   0x3   :  { %s31_s16 = sshll.u32 %s2026_s15, 4  ;;  %p1933_p0 = scmp.ne.s32.totalorder %s2223_s2, %s1932_s19  ;;  %s32_s16 = int_to_ptr.vmem [resolvable:$true] %s31_s16 }
   0x4   :  { %p1936_p1 = scmp.lt.u32.totalorder %s1932_s19, %s2223_s2 }
   0x6   :  { %p1938_p2 = pnand %p1936_p1, %p1933_p0 }
   0x8   :  { %1941 = shalt.err (!%p1938_p2)
}
   0x9   :  { %s1942_s24 = scalar_lea.vmem %s32_s16, 8448  ;;  %p1947_p4 = scmp.lt.s32.totalorder %s32_s16, %s32_s16 }
   0xa   :  { %p1943_p3 = scmp.ne.s32.totalorder %s32_s16, %s1942_s24  ;;  %p1948_p5 = scmp.lt.s32.totalorder %s1942_s24, %s1942_s24 }
   0xc   :  { %p1949_p6 = por %p1948_p5, %p1947_p4 }
   0xe   :  { %p1950_p7 = pnand %p1949_p6, %p1943_p3 }
  0x10   :  { %1953 = shalt.err (!%p1950_p7)
}
  0x11   :  { %s2027_s25 = smov 128   ;;  %s2028_s26 = smov 8  }
  0x12   :  { %37 = dma.hbm_to_vmem [thread:$0]  %s2223_s2, 8448, %s32_s16, [#allocation6], %s2027_s25, %s2027_s25, %s2028_s26  }
  0x13   :  { %s2029_s29 = smov [#allocation2]   ;;  %s1954_s7 = scalar_lea.hbm %s2222_s1, 1024 }
  0x14   :  { %s19_s30 = sshll.u32 %s2029_s29, 4  ;;  %p1955_p8 = scmp.ne.s32.totalorder %s2222_s1, %s1954_s7  ;;  %s20_s30 = int_to_ptr.vmem [resolvable:$true] %s19_s30 }
  0x15   :  { %p1958_p9 = scmp.lt.u32.totalorder %s1954_s7, %s2222_s1 }
  0x17   :  { %p1960_p10 = pnand %p1958_p9, %p1955_p8 }
  0x19   :  { %1963 = shalt.err (!%p1960_p10)
}
  0x1a   :  { %s1964_s12 = scalar_lea.vmem %s20_s30, 1024  ;;  %p1969_p12 = scmp.lt.s32.totalorder %s20_s30, %s20_s30 }
  0x1b   :  { %p1965_p11 = scmp.ne.s32.totalorder %s20_s30, %s1964_s12  ;;  %p1970_p13 = scmp.lt.s32.totalorder %s1964_s12, %s1964_s12 }
  0x1d   :  { %p1971_p0 = por %p1970_p13, %p1969_p12 }
  0x1f   :  { %p1972_p1 = pnand %p1971_p0, %p1965_p11 }
  0x21   :  { %1975 = shalt.err (!%p1972_p1)
}
  0x22   :  { %s2030_s2 = smov 256   ;;  %s2031_s13 = smov 16  }
  0x23   :  { %25 = dma.hbm_to_vmem [thread:$0]  %s2222_s1, 1024, %s20_s30, [#allocation3], %s2030_s2, %s2030_s2, %s2031_s13  }
  0x24   :  { %s2032_s16 = smov [#allocation7]   ;;  %s1976_s20 = scalar_lea.hbm %s2224_s3, 5632 }
  0x25   :  { %s43_s17 = sshll.u32 %s2032_s16, 4  ;;  %p1977_p2 = scmp.ne.s32.totalorder %s2224_s3, %s1976_s20  ;;  %s44_s17 = int_to_ptr.vmem [resolvable:$true] %s43_s17 }
  0x26   :  { %p1980_p3 = scmp.lt.u32.totalorder %s1976_s20, %s2224_s3 }
  0x28   :  { %p1982_p4 = pnand %p1980_p3, %p1977_p2 }
  0x2a   :  { %1985 = shalt.err (!%p1982_p4)
}
  0x2b   :  { %s1986_s25 = scalar_lea.vmem %s44_s17, 5632  ;;  %p1991_p6 = scmp.lt.s32.totalorder %s44_s17, %s44_s17 }
  0x2c   :  { %p1987_p5 = scmp.ne.s32.totalorder %s44_s17, %s1986_s25  ;;  %p1992_p7 = scmp.lt.s32.totalorder %s1986_s25, %s1986_s25 }
  0x2e   :  { %p1993_p8 = por %p1992_p7, %p1991_p6 }
  0x30   :  { %p1994_p9 = pnand %p1993_p8, %p1987_p5 }
  0x32   :  { %1997 = shalt.err (!%p1994_p9)
}
  0x33   :  { %s2033_s1 = smov 64   ;;  %s2034_s26 = smov 4  }
  0x34   :  { %49 = dma.hbm_to_vmem [thread:$0]  %s2224_s3, 5632, %s44_s17, [#allocation6], %s2033_s1, %s2033_s1, %s2034_s26  }
  0x35   :  { %2020 = dma.done.wait [#allocation3], 1024  }
  0x36   :  { %2021 = vsyncadd [#allocation3], 4294966272 }
  0x37   :  { %2022 = dma.done.wait [#allocation6], 14080  }
  0x38   :  { %2023 = vsyncadd [#allocation6], 4294953216  ;;  %v2035_v0 = vmov 0   ;;  %v1766_v1 = vld [vmem:[#allocation2 + $0x4] ss:$16 sps:$4 sm:$0xff]   ;;  %vm108_vm0 = vcmask 130048   ;;  %v72_v40 = vlaneseq }
  0x39   :  { %144 = vmatprep.mubr.bf16.mxu0 %v2035_v0  ;;  %185 = vmatprep.mubr.bf16.mxu1 %v2035_v0  ;;  %v1768_v2 = vld [vmem:[#allocation2] ss:$16 sps:$4 sm:$0xff]   ;;  %v1769_v5 = vld [vmem:[#allocation2 + $0xc] ss:$16 sps:$4 sm:$0xff]   ;;  %v1771_v6 = vld [vmem:[#allocation2 + $0x8] ss:$16 sps:$4 sm:$0xff]  }
  0x3a   :  { %v60_v3 = vld [vmem:[%s2221_s0] sm:$0xff]  ;;  %112 = vmatprep.subr.bf16.mxu0 %v1766_v1  ;;  %153 = vmatprep.subr.bf16.mxu1 %v1769_v5  ;;  %v1777_v9 = vld [vmem:[#allocation5 + $0x14] ss:$8 sps:$4 sm:$0xff]   ;;  %v1775_v10 = vld [vmem:[#allocation5 + $0x10] ss:$8 sps:$4 sm:$0xff]   ;;  %v2103_v41 = vshrl.u32 %v72_v40, 7 }
  0x3b   :  { %v65_v4 = vpack.c.bf16 %v60_v3, %v60_v3  ;;  %113 = vmatpush1.bf16.msra.mxu0 %v1768_v2  ;;  %v1772_v7 = vld [vmem:[#allocation5] ss:$8 sps:$4 sm:$0xff]   ;;  %v1774_v8 = vld [vmem:[#allocation5 + $0x4] ss:$8 sps:$4 sm:$0xff]   ;;  %154 = vmatpush1.bf16.msra.mxu1 %v1771_v6  ;;  %v1783_v13 = vld [vmem:[#allocation5 + $0x34] ss:$8 sps:$4 sm:$0xff]  }
  0x3c   :  { %720 = vmatprep.subr.bf16.mxu0 %v1774_v8  ;;  %v1780_v11 = vld [vmem:[#allocation5 + $0x24] ss:$8 sps:$4 sm:$0xff]   ;;  %v1778_v12 = vld [vmem:[#allocation5 + $0x20] ss:$8 sps:$4 sm:$0xff]   ;;  %v1781_v14 = vld [vmem:[#allocation5 + $0x30] ss:$8 sps:$4 sm:$0xff]  }
  0x3d   :  { %v1786_v15 = vld [vmem:[#allocation5 + $0x44] ss:$8 sps:$4 sm:$0xff]   ;;  %v1784_v16 = vld [vmem:[#allocation5 + $0x40] ss:$8 sps:$4 sm:$0xff]   ;;  %v1789_v17 = vld [vmem:[#allocation5 + $0x54] ss:$8 sps:$4 sm:$0xff]  }
  0x3e   :  { %1532 = vmatmul.mubr.msk.bf16.vlgmr.msra.gmra.mrb[0].mxu0 %vm108_vm0, %v65_v4  ;;  %1533 = vmatmul.mubr.msk.bf16.vlgmr.msra.gmra.mrb[0].mxu1 %vm108_vm0, %v65_v4  ;;  %v1787_v18 = vld [vmem:[#allocation5 + $0x50] ss:$8 sps:$4 sm:$0xff]   ;;  %v1792_v19 = vld [vmem:[#allocation5 + $0x64] ss:$8 sps:$4 sm:$0xff]   ;;  %v1790_v20 = vld [vmem:[#allocation5 + $0x60] ss:$8 sps:$4 sm:$0xff]  }
  0x3f   :  { %721 = vmatpush1.bf16.msra.mxu0 %v1772_v7  ;;  %v1795_v21 = vld [vmem:[#allocation5 + $0x74] ss:$8 sps:$4 sm:$0xff]   ;;  %v1793_v22 = vld [vmem:[#allocation5 + $0x70] ss:$8 sps:$4 sm:$0xff]   ;;  %v1798_v23 = vld [vmem:[#allocation5 + $0x84] ss:$8 sps:$4 sm:$0xff]  }
  0x40   :  { %722 = vmatprep.subr.bf16.mxu0 %v1777_v9  ;;  %v1796_v24 = vld [vmem:[#allocation5 + $0x80] ss:$8 sps:$4 sm:$0xff]   ;;  %v1801_v25 = vld [vmem:[#allocation5 + $0x94] ss:$8 sps:$4 sm:$0xff]   ;;  %v1799_v26 = vld [vmem:[#allocation5 + $0x90] ss:$8 sps:$4 sm:$0xff]  }
  0x41   :  { %v1804_v27 = vld [vmem:[#allocation5 + $0xa4] ss:$8 sps:$4 sm:$0xff]   ;;  %v1802_v28 = vld [vmem:[#allocation5 + $0xa0] ss:$8 sps:$4 sm:$0xff]   ;;  %v1807_v29 = vld [vmem:[#allocation5 + $0xb4] ss:$8 sps:$4 sm:$0xff]  }
  0x42   :  { %v1805_v30 = vld [vmem:[#allocation5 + $0xb0] ss:$8 sps:$4 sm:$0xff]   ;;  %v1810_v31 = vld [vmem:[#allocation5 + $0xc4] ss:$8 sps:$4 sm:$0xff]   ;;  %v1808_v32 = vld [vmem:[#allocation5 + $0xc0] ss:$8 sps:$4 sm:$0xff]  }
  0x43   :  { %723 = vmatpush1.bf16.msra.mxu0 %v1775_v10  ;;  %v1813_v33 = vld [vmem:[#allocation5 + $0xd4] ss:$8 sps:$4 sm:$0xff]   ;;  %v1811_v34 = vld [vmem:[#allocation5 + $0xd0] ss:$8 sps:$4 sm:$0xff]   ;;  %v1816_v35 = vld [vmem:[#allocation5 + $0xe4] ss:$8 sps:$4 sm:$0xff]  }
  0x44   :  { %724 = vmatprep.subr.bf16.mxu0 %v1780_v11  ;;  %v1814_v36 = vld [vmem:[#allocation5 + $0xe0] ss:$8 sps:$4 sm:$0xff]   ;;  %v1819_v37 = vld [vmem:[#allocation5 + $0xf4] ss:$8 sps:$4 sm:$0xff]   ;;  %v1817_v38 = vld [vmem:[#allocation5 + $0xf0] ss:$8 sps:$4 sm:$0xff]  }
  0x45   :  { %v1822_v39 = vld [vmem:[#allocation5 + $0x104] ss:$8 sps:$4 sm:$0xff]   ;;  %v2109_v44 = vsub.s32 0, %v2103_v41  ;;  %vm2037_vm1 = vmmov 0   ;;  %vm1496_vm2 = vcmask 171008   ;;  %s2038_s0 = smov [#allocation8]  }
  0x46   :  { %v2105_v42 = vld [vmem:[#allocation2 + $0x20] sm:$0x11]  ;;  %v2111_v45 = vld [vmem:[#allocation2 + $0x28] sm:$0x11]  ;;  %s1518_s3 = sshll.u32 %s2038_s0, 4  ;;  %s1519_s3 = int_to_ptr.vmem [resolvable:$true] %s1518_s3 }
  0x47   :  { %725 = vmatpush1.bf16.msra.mxu0 %v1778_v12  ;;  %v68_v43 = vunpack.c.l.bf16 %v2105_v42  ;;  %v69_v46 = vunpack.c.h.bf16 %v2105_v42  ;;  %v71_v47 = vunpack.c.h.bf16 %v2111_v45  ;;  %v70_v10 = vunpack.c.l.bf16 %v2111_v45  ;;  %v1865_v45 = vld [vmem:[#allocation5 + $0x1f0] ss:$8 sps:$4 sm:$0xff]   ;;  %s1998_s5 = scalar_lea.vmem %s1519_s3, 128  ;;  %p2003_p11 = scmp.lt.s32.totalorder %s1519_s3, %s1519_s3 }
  0x48   :  { %726 = vmatprep.subr.bf16.mxu0 %v1783_v13  ;;  %p1999_p10 = scmp.ne.s32.totalorder %s1519_s3, %s1998_s5  ;;  %p2004_p12 = scmp.lt.s32.totalorder %s1998_s5, %s1998_s5 }
  0x49   :  { %v75_v48 = vrot.slane %v68_v43, %v2109_v44  ;;  %v79_v49 = vrot.slane %v69_v46, %v2109_v44  ;;  %v87_v51 = vrot.slane %v71_v47, %v2109_v44 }
  0x4a   :  { %p2005_p13 = por %p2004_p12, %p2003_p11 }
  0x4b   :  { %727 = vmatpush1.bf16.msra.mxu0 %v1781_v14 }
  0x4c   :  { %728 = vmatprep.subr.bf16.mxu0 %v1786_v15  ;;  %p2006_p0 = pnand %p2005_p13, %p1999_p10 }
  0x4f   :  { %729 = vmatpush1.bf16.msra.mxu0 %v1784_v16 }
  0x50   :  { %730 = vmatprep.subr.bf16.mxu0 %v1789_v17  ;;  %v83_v17 = vrot.slane %v70_v10, %v2109_v44 }
  0x53   :  { %731 = vmatpush1.bf16.msra.mxu0 %v1787_v18 }
  0x54   :  { %732 = vmatprep.subr.bf16.mxu0 %v1792_v19 }
  0x57   :  { %733 = vmatpush1.bf16.msra.mxu0 %v1790_v20 }
  0x58   :  { %734 = vmatprep.subr.bf16.mxu0 %v1795_v21 }
  0x5b   :  { %735 = vmatpush1.bf16.msra.mxu0 %v1793_v22 }
  0x5c   :  { %736 = vmatprep.subr.bf16.mxu0 %v1798_v23 }
  0x5f   :  { %737 = vmatpush1.bf16.msra.mxu0 %v1796_v24 }
  0x60   :  { %738 = vmatprep.subr.bf16.mxu0 %v1801_v25 }
  0x63   :  { %739 = vmatpush1.bf16.msra.mxu0 %v1799_v26 }
  0x64   :  { %740 = vmatprep.subr.bf16.mxu0 %v1804_v27 }
  0x67   :  { %741 = vmatpush1.bf16.msra.mxu0 %v1802_v28 }
  0x68   :  { %742 = vmatprep.subr.bf16.mxu0 %v1807_v29 }
  0x6b   :  { %743 = vmatpush1.bf16.msra.mxu0 %v1805_v30 }
  0x6c   :  { %744 = vmatprep.subr.bf16.mxu0 %v1810_v31 }
  0x6f   :  { %745 = vmatpush1.bf16.msra.mxu0 %v1808_v32 }
  0x70   :  { %746 = vmatprep.subr.bf16.mxu0 %v1813_v33 }
  0x73   :  { %747 = vmatpush1.bf16.msra.mxu0 %v1811_v34 }
  0x74   :  { %748 = vmatprep.subr.bf16.mxu0 %v1816_v35 }
  0x77   :  { %749 = vmatpush1.bf16.msra.mxu0 %v1814_v36 }
  0x78   :  { %750 = vmatprep.subr.bf16.mxu0 %v1819_v37 }
  0x7b   :  { %751 = vmatpush1.bf16.msra.mxu0 %v1817_v38 }
  0x7c   :  { %761 = vmatprep.subr.bf16.mxu0 %v1822_v39 }
 0x111   :  { %v146_v50 = vpop.f32.mrb[0].mxu0  ;;  %v187_v56 = vpop.f32.mrb[0].mxu1 }
 0x112   :  { %v147_v52 = vadd.f32 %v146_v50, %v75_v48  ;;  %v148_v53 = vpop.f32.mrb[1].mxu0  ;;  %v189_v59 = vpop.f32.mrb[1].mxu1  ;;  %v188_v24 = vadd.f32 %v187_v56, %v83_v17 }
 0x113   :  { %v149_v54 = vadd.f32 %v148_v53, %v79_v49  ;;  %v150_v55 = vpop.f32.mrb[2].mxu0  ;;  %v190_v61 = vadd.f32 %v189_v59, %v87_v51  ;;  %v191_v62 = vpop.f32.mrb[2].mxu1 }
 0x114   :  { %v194_v57 = vmax.f32 %v147_v52, 0.0  ;;  %v151_v58 = vpop.f32.mrb[3].mxu0  ;;  %v192_v0 = vpop.f32.mrb[3].mxu1  ;;  %v196_v31 = vmax.f32 %v188_v24, 0.0 }
 0x115   :  { %v195_v60 = vmax.f32 %v149_v54, 0.0  ;;  %v197_v2 = vmax.f32 %v190_v61, 0.0 }
 0x116   :  { %v204_v63 = vrot.slane %v194_v57, 4  ;;  %v216_v38 = vrot.slane %v196_v31, 4 }
 0x117   :  { %v210_v1 = vrot.slane %v195_v60, 4  ;;  %v222_v5 = vrot.slane %v197_v2, 4 }
 0x118   :  { %v205_v3 = vadd.f32 %v204_v63, %v194_v57  ;;  %v217_v52 = vadd.f32 %v216_v38, %v196_v31 }
 0x119   :  { %v211_v4 = vadd.f32 %v210_v1, %v195_v60  ;;  %v223_v8 = vadd.f32 %v222_v5, %v197_v2 }
 0x11a   :  { %v206_v6 = vrot.slane %v205_v3, 2  ;;  %v218_v59 = vrot.slane %v217_v52, 2 }
 0x11b   :  { %v212_v7 = vrot.slane %v211_v4, 2  ;;  %v224_v12 = vrot.slane %v223_v8, 2 }
 0x11c   :  { %v207_v9 = vadd.f32 %v206_v6, %v205_v3  ;;  %v219_v1 = vadd.f32 %v218_v59, %v217_v52  ;;  %v2129_v6 = vsub.s32 1, %v2103_v41  ;;  %v1837_v52 = vld [vmem:[#allocation5 + $0x154] ss:$8 sps:$4 sm:$0xff]  }
 0x11d   :  { %v213_v11 = vadd.f32 %v212_v7, %v211_v4  ;;  %v225_v15 = vadd.f32 %v224_v12, %v223_v8  ;;  %v198_v4 = vld [vmem:[#allocation2 + $0x20] sm:$0x22]  ;;  %v2132_v8 = vsub.s32 2, %v2103_v41 }
 0x11e   :  { %v208_v13 = vrot.slane %v207_v9, 1  ;;  %v220_v3 = vrot.slane %v219_v1, 1  ;;  %v200_v7 = vunpack.c.l.bf16 %v198_v4  ;;  %v201_v12 = vunpack.c.h.bf16 %v198_v4  ;;  %v1855_v4 = vld [vmem:[#allocation5 + $0x1b4] ss:$8 sps:$4 sm:$0xff]  }
 0x11f   :  { %v214_v14 = vrot.slane %v213_v11, 1  ;;  %v226_v19 = vrot.slane %v225_v15, 1 }
 0x120   :  { %v209_v16 = vadd.f32 %v208_v13, %v207_v9  ;;  %v221_v5 = vadd.f32 %v220_v3, %v219_v1  ;;  %v2134_v9 = vld [vmem:[#allocation2 + $0x28] sm:$0x22]  ;;  %v304_v41 = vrot.slane %v200_v7, %v2132_v8  ;;  %v1847_v1 = vld [vmem:[#allocation5 + $0x190] ss:$8 sps:$4 sm:$0xff]  }
 0x121   :  { %v215_v18 = vadd.f32 %v214_v14, %v213_v11  ;;  %v227_v22 = vadd.f32 %v226_v19, %v225_v15  ;;  %v203_v17 = vunpack.c.h.bf16 %v2134_v9  ;;  %v1850_v3 = vld [vmem:[#allocation5 + $0x1a0] ss:$8 sps:$4 sm:$0xff]   ;;  %v1858_v7 = vld [vmem:[#allocation5 + $0x1c4] ss:$8 sps:$4 sm:$0xff]  }
 0x122   :  { %v229_v20 = vmul.f32 0.125, %v209_v16  ;;  %v231_v16 = vmul.f32 0.125, %v221_v5  ;;  %v1853_v5 = vld [vmem:[#allocation5 + $0x1b0] ss:$8 sps:$4 sm:$0xff]  }
 0x123   :  { %v230_v21 = vmul.f32 0.125, %v215_v18  ;;  %v232_v26 = vmul.f32 0.125, %v227_v22  ;;  %v308_v22 = vrot.slane %v201_v12, %v2132_v8  ;;  %v1856_v12 = vld [vmem:[#allocation5 + $0x1c0] ss:$8 sps:$4 sm:$0xff]  }
 0x124   :  { %v233_v23 = vsub.f32 %v194_v57, %v229_v20 }
 0x125   :  { %v234_v25 = vsub.f32 %v195_v60, %v230_v21  ;;  %v236_v29 = vsub.f32 %v197_v2, %v232_v26  ;;  %v316_v26 = vrot.slane %v203_v17, %v2132_v8  ;;  %v202_v17 = vunpack.c.l.bf16 %v2134_v9  ;;  %v1870_v9 = vld [vmem:[#allocation7 + $0x48] sm:$0xff]  }
 0x126   :  { %v237_v27 = vmul.f32 %v233_v23, %v233_v23 }
 0x127   :  { %v238_v28 = vmul.f32 %v234_v25, %v234_v25  ;;  %v240_v33 = vmul.f32 %v236_v29, %v236_v29 }
 0x128   :  { %v241_v30 = vrot.slane %v237_v27, 4 }
 0x129   :  { %v247_v32 = vrot.slane %v238_v28, 4  ;;  %v259_v36 = vrot.slane %v240_v33, 4 }
 0x12a   :  { %v242_v34 = vadd.f32 %v241_v30, %v237_v27 }
 0x12b   :  { %v248_v35 = vadd.f32 %v247_v32, %v238_v28  ;;  %v260_v40 = vadd.f32 %v259_v36, %v240_v33  ;;  %v1825_v36 = vld [vmem:[#allocation5 + $0x114] ss:$8 sps:$4 sm:$0xff]  }
 0x12c   :  { %v243_v37 = vrot.slane %v242_v34, 2 }
 0x12d   :  { %v249_v39 = vrot.slane %v248_v35, 2  ;;  %v261_v50 = vrot.slane %v260_v40, 2 }
 0x12e   :  { %v244_v48 = vadd.f32 %v243_v37, %v242_v34  ;;  %v1828_v37 = vld [vmem:[#allocation5 + $0x124] ss:$8 sps:$4 sm:$0xff]  }
 0x12f   :  { %v250_v49 = vadd.f32 %v249_v39, %v248_v35  ;;  %v262_v54 = vadd.f32 %v261_v50, %v260_v40  ;;  %v1831_v39 = vld [vmem:[#allocation5 + $0x134] ss:$8 sps:$4 sm:$0xff]  }
 0x130   :  { %v245_v51 = vrot.slane %v244_v48, 1 }
 0x131   :  { %v251_v53 = vrot.slane %v250_v49, 1  ;;  %v263_v57 = vrot.slane %v262_v54, 1 }
 0x132   :  { %v246_v55 = vadd.f32 %v245_v51, %v244_v48  ;;  %v1829_v48 = vld [vmem:[#allocation5 + $0x130] ss:$8 sps:$4 sm:$0xff]   ;;  %v1832_v51 = vld [vmem:[#allocation5 + $0x140] ss:$8 sps:$4 sm:$0xff]  }
 0x133   :  { %v252_v56 = vadd.f32 %v251_v53, %v250_v49  ;;  %v264_v61 = vadd.f32 %v263_v57, %v262_v54  ;;  %v1834_v49 = vld [vmem:[#allocation5 + $0x144] ss:$8 sps:$4 sm:$0xff]   ;;  %v1835_v54 = vld [vmem:[#allocation5 + $0x150] ss:$8 sps:$4 sm:$0xff]   ;;  %v1838_v57 = vld [vmem:[#allocation5 + $0x160] ss:$8 sps:$4 sm:$0xff]  }
 0x134   :  { %v265_v58 = vmul.f32 0.125, %v246_v55  ;;  %v1840_v55 = vld [vmem:[#allocation5 + $0x164] ss:$8 sps:$4 sm:$0xff]  }
 0x135   :  { %v266_v60 = vmul.f32 0.125, %v252_v56  ;;  %v268_v0 = vmul.f32 0.125, %v264_v61  ;;  %v1846_v61 = vld [vmem:[#allocation5 + $0x184] ss:$8 sps:$4 sm:$0xff]  }
 0x136   :  { %v269_v62 = vadd.f32 1e-05, %v265_v58  ;;  %v1843_v58 = vld [vmem:[#allocation5 + $0x174] ss:$8 sps:$4 sm:$0xff]  }
 0x137   :  { %v270_v63 = vadd.f32 1e-05, %v266_v60  ;;  %v272_v2 = vadd.f32 1e-05, %v268_v0  ;;  %v1841_v60 = vld [vmem:[#allocation5 + $0x170] ss:$8 sps:$4 sm:$0xff]  }
 0x138   :  { %1908 = vrsqrt.f32 %v269_v62  ;;  %v1849_v0 = vld [vmem:[#allocation5 + $0x194] ss:$8 sps:$4 sm:$0xff]  }
 0x139   :  { %1910 = vrsqrt.f32 %v270_v63  ;;  %v1844_v63 = vld [vmem:[#allocation5 + $0x180] ss:$8 sps:$4 sm:$0xff]  }
 0x13a   :  { %1912 = vrsqrt.f32 %v272_v2  ;;  %v1852_v2 = vld [vmem:[#allocation5 + $0x1a4] ss:$8 sps:$4 sm:$0xff]  }
 0x142   :  { %v1909_v11 = vpop.eup %1908 }
 0x143   :  { %v1911_v13 = vpop.eup %1910  ;;  %v277_v14 = vmul.f32 %v1909_v11, %v68_v43  ;;  %v2147_v43 = vsub.f32 %v196_v31, %v231_v16 }
 0x144   :  { %v278_v15 = vmul.f32 %v1911_v13, %v69_v46  ;;  %v1913_v18 = vpop.eup %1912 }
 0x145   :  { %v284_v19 = vrot.slane %v277_v14, %v2129_v6  ;;  %v280_v20 = vmul.f32 %v1913_v18, %v71_v47  ;;  %v239_v32 = vmul.f32 %v2147_v43, %v2147_v43  ;;  %v1820_v47 = vld [vmem:[#allocation5 + $0x100] ss:$8 sps:$4 sm:$0xff]   ;;  %v1861_v14 = vld [vmem:[#allocation5 + $0x1d4] ss:$8 sps:$4 sm:$0xff]   ;;  %v1864_v18 = vld [vmem:[#allocation5 + $0x1e4] ss:$8 sps:$4 sm:$0xff]  }
 0x146   :  { %v288_v21 = vrot.slane %v278_v15, %v2129_v6  ;;  %v1859_v15 = vld [vmem:[#allocation5 + $0x1d0] ss:$8 sps:$4 sm:$0xff]  }
 0x147   :  { %v297_v24 = vmul.f32 %v284_v19, %v233_v23  ;;  %v296_v46 = vrot.slane %v280_v20, %v2129_v6  ;;  %v253_v31 = vrot.slane %v239_v32, 4  ;;  %v1862_v19 = vld [vmem:[#allocation5 + $0x1e0] ss:$8 sps:$4 sm:$0xff]   ;;  %v1867_v20 = vld [vmem:[#allocation5 + $0x1f4] ss:$8 sps:$4 sm:$0xff]  }
 0x148   :  { %v298_v42 = vmul.f32 %v288_v21, %v234_v25  ;;  %v1823_v25 = vld [vmem:[#allocation5 + $0x110] ss:$8 sps:$4 sm:$0xff]   ;;  %v312_v21 = vrot.slane %v202_v17, %v2132_v8 }
 0x149   :  { %v317_v27 = vadd.f32 %v304_v41, %v297_v24  ;;  %v300_v30 = vmul.f32 %v296_v46, %v236_v29  ;;  %v254_v38 = vadd.f32 %v253_v31, %v239_v32  ;;  %v1826_v29 = vld [vmem:[#allocation5 + $0x120] ss:$8 sps:$4 sm:$0xff]   ;;  %v1868_v24 = vld [vmem:[#allocation7 + $0x40] sm:$0xff]   ;;  %v1871_v46 = vld [vmem:[#allocation7 + $0x8] sm:$0xff]  }
 0x14a   :  { %v318_v28 = vadd.f32 %v308_v22, %v298_v42  ;;  %v1869_v42 = vld [vmem:[#allocation7] sm:$0xff]   ;;  %1638 = vmatprep.subr.bf16.mxu1 %v1868_v24  ;;  %v389_v31 = vld [vmem:[#allocation5 + $0x200] sm:$0x11] }
 0x14b   :  { %v320_v34 = vadd.f32 %v316_v26, %v300_v30  ;;  %v385_v35 = vpack.c.bf16 %v317_v27, %v317_v27  ;;  %v255_v40 = vrot.slane %v254_v38, 2  ;;  %1639 = vmatpush3.bf16.msra.mxu1 %v1869_v42  ;;  %v1873_v26 = vld [vmem:[#allocation7 + $0x10] sm:$0xff]   ;;  %v1874_v27 = vld [vmem:[#allocation7 + $0x58] sm:$0xff]   ;;  %v1876_v30 = vld [vmem:[#allocation7 + $0x60] sm:$0xff]  }
 0x14c   :  { %v386_v33 = vpack.c.bf16 %v318_v28, %v318_v28  ;;  %1640 = vmatprep.subr.bf16.mxu1 %v1870_v9  ;;  %v1875_v28 = vld [vmem:[#allocation7 + $0x18] sm:$0xff]   ;;  %v1877_v32 = vld [vmem:[#allocation7 + $0x20] sm:$0xff]   ;;  %v804_v9 = vld [vmem:[#allocation5 + $0x200] sm:$0x22] }
 0x14d   :  { %v388_v23 = vpack.c.bf16 %v320_v34, %v320_v34  ;;  %v256_v50 = vadd.f32 %v255_v40, %v254_v38  ;;  %v1880_v34 = vld [vmem:[#allocation7 + $0x70] sm:$0xff]  }
 0x14e   :  { %752 = vmatprep.mubr.bf16.mxu0 %v386_v33  ;;  %v1878_v33 = vld [vmem:[#allocation7 + $0x68] sm:$0xff]  }
 0x14f   :  { %753 = vmatmul.mubr.bf16.vlgmr.msra.gmra.mrb[4].mxu0 %v385_v35  ;;  %v257_v53 = vrot.slane %v256_v50, 1  ;;  %1641 = vmatpush3.bf16.msra.mxu1 %v1871_v46  ;;  %v1881_v35 = vld [vmem:[#allocation7 + $0x30] sm:$0xff]   ;;  %v805_v46 = vunpack.c.l.bf16 %v804_v9 }
 0x150   :  { %762 = vmatpush1.bf16.msra.mxu0 %v1820_v47  ;;  %793 = vmatprep.mubr.bf16.mxu0 %v388_v23  ;;  %v1879_v47 = vld [vmem:[#allocation7 + $0x28] sm:$0xff]   ;;  %v1883_v23 = vld [vmem:[#allocation7 + $0x38] sm:$0xff]  }
 0x151   :  { %763 = vmatprep.subr.bf16.mxu0 %v1825_v36  ;;  %v258_v56 = vadd.f32 %v257_v53, %v256_v50  ;;  %v1882_v36 = vld [vmem:[#allocation7 + $0x78] sm:$0xff]  }
 0x153   :  { %v267_v59 = vmul.f32 0.125, %v258_v56 }
 0x154   :  { %764 = vmatpush1.bf16.msra.mxu0 %v1823_v25  ;;  %v390_v25 = vunpack.c.l.bf16 %v389_v31 }
 0x155   :  { %765 = vmatprep.subr.bf16.mxu0 %v1828_v37  ;;  %v271_v62 = vadd.f32 1e-05, %v267_v59  ;;  %v391_v37 = vunpack.c.h.bf16 %v389_v31 }
 0x156   :  { %v395_v38 = vrot.slane %v390_v25, %v2109_v44 }
 0x157   :  { %1914 = vrsqrt.f32 %v271_v62 }
 0x158   :  { %766 = vmatpush1.bf16.msra.mxu0 %v1826_v29  ;;  %v399_v29 = vrot.slane %v391_v37, %v2109_v44 }
 0x159   :  { %767 = vmatprep.subr.bf16.mxu0 %v1831_v39 }
 0x15c   :  { %768 = vmatpush1.bf16.msra.mxu0 %v1829_v48 }
 0x15d   :  { %769 = vmatprep.subr.bf16.mxu0 %v1834_v49 }
 0x160   :  { %770 = vmatpush1.bf16.msra.mxu0 %v1832_v51 }
 0x161   :  { %771 = vmatprep.subr.bf16.mxu0 %v1837_v52  ;;  %v1915_v11 = vpop.eup %1914 }
 0x162   :  { %v279_v13 = vmul.f32 %v1915_v11, %v70_v10 }
 0x164   :  { %772 = vmatpush1.bf16.msra.mxu0 %v1835_v54  ;;  %v292_v16 = vrot.slane %v279_v13, %v2129_v6 }
 0x165   :  { %773 = vmatprep.subr.bf16.mxu0 %v1840_v55 }
 0x166   :  { %v299_v41 = vmul.f32 %v292_v16, %v2147_v43  ;;  %v1872_v43 = vld [vmem:[#allocation7 + $0x50] sm:$0xff]  }
 0x167   :  { %1642 = vmatprep.subr.bf16.mxu1 %v1872_v43 }
 0x168   :  { %774 = vmatpush1.bf16.msra.mxu0 %v1838_v57  ;;  %v319_v10 = vadd.f32 %v312_v21, %v299_v41  ;;  %1643 = vmatpush3.bf16.msra.mxu1 %v1873_v26  ;;  %v806_v26 = vunpack.c.h.bf16 %v804_v9 }
 0x169   :  { %775 = vmatprep.subr.bf16.mxu0 %v1843_v58  ;;  %1644 = vmatprep.subr.bf16.mxu1 %v1874_v27 }
 0x16a   :  { %v387_v22 = vpack.c.bf16 %v319_v10, %v319_v10 }
 0x16c   :  { %776 = vmatpush1.bf16.msra.mxu0 %v1841_v60  ;;  %1645 = vmatpush3.bf16.msra.mxu1 %v1875_v28 }
 0x16d   :  { %777 = vmatprep.subr.bf16.mxu0 %v1846_v61  ;;  %1646 = vmatprep.subr.bf16.mxu1 %v1876_v30 }
 0x170   :  { %778 = vmatpush1.bf16.msra.mxu0 %v1844_v63  ;;  %1647 = vmatpush3.bf16.msra.mxu1 %v1877_v32 }
 0x171   :  { %779 = vmatprep.subr.bf16.mxu0 %v1849_v0  ;;  %1648 = vmatprep.subr.bf16.mxu1 %v1878_v33  ;;  %v858_v33 = vrot.slane %v805_v46, %v2132_v8  ;;  %v1892_v46 = vld [vmem:[#allocation7 + $0xd0] sm:$0xff]  }
 0x174   :  { %780 = vmatpush1.bf16.msra.mxu0 %v1847_v1  ;;  %1649 = vmatpush3.bf16.msra.mxu1 %v1879_v47 }
 0x175   :  { %781 = vmatprep.subr.bf16.mxu0 %v1852_v2  ;;  %1650 = vmatprep.subr.bf16.mxu1 %v1880_v34  ;;  %v862_v34 = vrot.slane %v806_v26, %v2132_v8  ;;  %v1894_v26 = vld [vmem:[#allocation7 + $0xe0] sm:$0xff]  }
 0x178   :  { %782 = vmatpush1.bf16.msra.mxu0 %v1850_v3  ;;  %1651 = vmatpush3.bf16.msra.mxu1 %v1881_v35 }
 0x179   :  { %783 = vmatprep.subr.bf16.mxu0 %v1855_v4  ;;  %1652 = vmatprep.subr.bf16.mxu1 %v1882_v36 }
 0x17c   :  { %784 = vmatpush1.bf16.msra.mxu0 %v1853_v5  ;;  %1653 = vmatpush3.bf16.msra.mxu1 %v1883_v23 }
 0x17d   :  { %785 = vmatprep.subr.bf16.mxu0 %v1858_v7 }
 0x180   :  { %786 = vmatpush1.bf16.msra.mxu0 %v1856_v12 }
 0x181   :  { %787 = vmatprep.subr.bf16.mxu0 %v1861_v14 }
 0x184   :  { %788 = vmatpush1.bf16.msra.mxu0 %v1859_v15 }
 0x185   :  { %789 = vmatprep.subr.bf16.mxu0 %v1864_v18 }
 0x188   :  { %790 = vmatpush1.bf16.msra.mxu0 %v1862_v19 }
 0x189   :  { %791 = vmatprep.subr.bf16.mxu0 %v1867_v20 }
 0x18c   :  { %792 = vmatpush1.bf16.msra.mxu0 %v1865_v45 }
 0x18f   :  { %794 = vmatmul.mubr.bf16.vlgmr.msra.gmra.mrb[4].mxu0 %v387_v22 }
 0x262   :  { %v795_v39 = vpop.f32.mrb[4].mxu0 }
 0x263   :  { %v1747_v40 = vadd.f32 %v795_v39, %v395_v38  ;;  %v797_v48 = vpop.f32.mrb[5].mxu0  ;;  %v1884_v39 = vld [vmem:[#allocation7 + $0x88] sm:$0xff]  }
 0x264   :  { %v1748_v49 = vadd.f32 %v797_v48, %v399_v29  ;;  %v799_v50 = vpop.f32.mrb[6].mxu0  ;;  %v1887_v48 = vld [vmem:[#allocation7 + $0xa0] sm:$0xff]  }
 0x265   :  { %v802_v51 = vmax.f32 %v1747_v40, 0.0  ;;  %v800_v52 = vpop.f32.mrb[7].mxu0  ;;  %v2036_v40 = vmov 0.0   ;;  %v1889_v50 = vld [vmem:[#allocation7 + $0xb0] sm:$0xff]  }
 0x266   :  { %v803_v53 = vmax.f32 %v1748_v49, 0.0  ;;  %1687 = vmatprep.subr.bf16.mxu1 %v2036_v40  ;;  %v1888_v49 = vld [vmem:[#allocation7 + $0xa8] sm:$0xff]   ;;  %v1891_v52 = vld [vmem:[#allocation7 + $0xc0] sm:$0xff]  }
 0x267   :  { %v807_v54 = vrot.slane %v802_v51, 4 }
 0x268   :  { %v813_v55 = vrot.slane %v803_v53, 4 }
 0x269   :  { %v808_v56 = vadd.f32 %v807_v54, %v802_v51 }
 0x26a   :  { %v814_v57 = vadd.f32 %v813_v55, %v803_v53 }
 0x26b   :  { %v809_v58 = vrot.slane %v808_v56, 2 }
 0x26c   :  { %v815_v59 = vrot.slane %v814_v57, 2 }
 0x26d   :  { %v810_v60 = vadd.f32 %v809_v58, %v808_v56 }
 0x26e   :  { %v816_v61 = vadd.f32 %v815_v59, %v814_v57 }
 0x26f   :  { %v811_v62 = vrot.slane %v810_v60, 1 }
 0x270   :  { %v817_v63 = vrot.slane %v816_v61, 1 }
 0x271   :  { %v812_v0 = vadd.f32 %v811_v62, %v810_v60 }
 0x272   :  { %v818_v1 = vadd.f32 %v817_v63, %v816_v61 }
 0x273   :  { %v819_v2 = vmul.f32 0.125, %v812_v0 }
 0x274   :  { %v820_v3 = vmul.f32 0.125, %v818_v1 }
 0x275   :  { %v821_v4 = vsub.f32 %v802_v51, %v819_v2  ;;  %v1890_v51 = vld [vmem:[#allocation7 + $0xb8] sm:$0xff]  }
 0x276   :  { %v822_v5 = vsub.f32 %v803_v53, %v820_v3  ;;  %v899_v53 = vld [vmem:[#allocation7 + $0x80] sm:$0x1] }
 0x277   :  { %v823_v7 = vmul.f32 %v821_v4, %v821_v4  ;;  %v900_v54 = vunpack.c.l.bf16 %v899_v53 }
 0x278   :  { %v824_v11 = vmul.f32 %v822_v5, %v822_v5 }
 0x279   :  { %v825_v12 = vrot.slane %v823_v7, 4  ;;  %v904_v56 = vrot.slane %v900_v54, %v2109_v44 }
 0x27a   :  { %v831_v13 = vrot.slane %v824_v11, 4 }
 0x27b   :  { %v826_v14 = vadd.f32 %v825_v12, %v823_v7 }
 0x27c   :  { %v832_v15 = vadd.f32 %v831_v13, %v824_v11 }
 0x27d   :  { %v827_v16 = vrot.slane %v826_v14, 2 }
 0x27e   :  { %v833_v17 = vrot.slane %v832_v15, 2 }
 0x27f   :  { %v828_v18 = vadd.f32 %v827_v16, %v826_v14 }
 0x280   :  { %v834_v19 = vadd.f32 %v833_v17, %v832_v15 }
 0x281   :  { %v829_v41 = vrot.slane %v828_v18, 1 }
 0x282   :  { %v835_v20 = vrot.slane %v834_v19, 1 }
 0x283   :  { %v830_v21 = vadd.f32 %v829_v41, %v828_v18  ;;  %v1042_v41 = vld [vmem:[#allocation7 + $0x80] sm:$0x2] }
 0x284   :  { %v836_v45 = vadd.f32 %v835_v20, %v834_v19  ;;  %v1043_v20 = vunpack.c.l.bf16 %v1042_v41  ;;  %v1233_v41 = vld [vmem:[#allocation7 + $0x110] sm:$0x1] }
 0x285   :  { %v837_v10 = vmul.f32 0.125, %v830_v21 }
 0x286   :  { %v838_v22 = vmul.f32 0.125, %v836_v45 }
 0x287   :  { %v839_v24 = vadd.f32 1e-05, %v837_v10 }
 0x288   :  { %v840_v42 = vadd.f32 1e-05, %v838_v22  ;;  %v1071_v22 = vrot.slane %v1043_v20, %v2132_v8  ;;  %v1234_v20 = vunpack.c.l.bf16 %v1233_v41 }
 0x289   :  { %1916 = vrsqrt.f32 %v839_v24 }
 0x28a   :  { %1918 = vrsqrt.f32 %v840_v42 }
 0x293   :  { %v1917_v43 = vpop.eup %1916 }
 0x294   :  { %v1919_v27 = vpop.eup %1918  ;;  %v843_v28 = vmul.f32 %v1917_v43, %v390_v25  ;;  %v1885_v25 = vld [vmem:[#allocation7 + $0x90] sm:$0xff]   ;;  %v1893_v43 = vld [vmem:[#allocation7 + $0xd8] sm:$0xff]  }
 0x295   :  { %v844_v30 = vmul.f32 %v1919_v27, %v391_v37  ;;  %v1886_v37 = vld [vmem:[#allocation7 + $0x98] sm:$0xff]   ;;  %v1895_v27 = vld [vmem:[#allocation7 + $0xe8] sm:$0xff]  }
 0x296   :  { %v848_v32 = vrot.slane %v843_v28, %v2129_v6  ;;  %v1896_v28 = vld [vmem:[#allocation7 + $0xf0] sm:$0xff]  }
 0x297   :  { %v852_v47 = vrot.slane %v844_v30, %v2129_v6  ;;  %v1897_v30 = vld [vmem:[#allocation7 + $0xf8] sm:$0xff]  }
 0x298   :  { %v853_v35 = vmul.f32 %v848_v32, %v821_v4  ;;  %v1898_v32 = vld [vmem:[#allocation7 + $0x100] sm:$0xff]  }
 0x299   :  { %v854_v36 = vmul.f32 %v852_v47, %v822_v5  ;;  %v1090_v47 = vld [vmem:[#allocation7 + $0xc8] sm:$0x1] }
 0x29a   :  { %v863_v23 = vadd.f32 %v858_v33, %v853_v35  ;;  %v1899_v33 = vld [vmem:[#allocation7 + $0x108] sm:$0xff]  }
 0x29b   :  { %v864_v31 = vadd.f32 %v862_v34, %v854_v36  ;;  %v1091_v34 = vunpack.c.l.bf16 %v1090_v47 }
 0x29c   :  { %v897_v29 = vpack.c.bf16 %v863_v23, %v863_v23 }
 0x29d   :  { %v898_v38 = vpack.c.bf16 %v864_v31, %v864_v31  ;;  %v1095_v35 = vrot.slane %v1091_v34, %v2109_v44 }
 0x29f   :  { %1033 = vmatprep.mubr.bf16.mxu1 %v898_v38 }
 0x2a0   :  { %1034 = vmatmul.mubr.bf16.vlgmr.msra.gmra.mrb[4].mxu1 %v897_v29 }
 0x2a1   :  { %1688 = vmatpush3.bf16.msra.mxu1 %v1884_v39  ;;  %1703 = vmatprep.mubr.msk.bf16.mxu1 %vm2037_vm1, %v2036_v40 }
 0x2a2   :  { %1689 = vmatprep.subr.bf16.mxu1 %v2036_v40 }
 0x2a5   :  { %1690 = vmatpush3.bf16.msra.mxu1 %v1885_v25 }
 0x2a6   :  { %1691 = vmatprep.subr.bf16.mxu1 %v2036_v40 }
 0x2a9   :  { %1692 = vmatpush3.bf16.msra.mxu1 %v1886_v37 }
 0x2aa   :  { %1693 = vmatprep.subr.bf16.mxu1 %v2036_v40 }
 0x2ad   :  { %1694 = vmatpush3.bf16.msra.mxu1 %v1887_v48 }
 0x2ae   :  { %1695 = vmatprep.subr.bf16.mxu1 %v2036_v40 }
 0x2b1   :  { %1696 = vmatpush3.bf16.msra.mxu1 %v1888_v49 }
 0x2b2   :  { %1697 = vmatprep.subr.bf16.mxu1 %v2036_v40 }
 0x2b5   :  { %1698 = vmatpush3.bf16.msra.mxu1 %v1889_v50 }
 0x2b6   :  { %1699 = vmatprep.subr.bf16.mxu1 %v2036_v40 }
 0x2b9   :  { %1700 = vmatpush3.bf16.msra.mxu1 %v1890_v51 }
 0x2ba   :  { %1701 = vmatprep.subr.bf16.mxu1 %v2036_v40 }
 0x2bd   :  { %1702 = vmatpush3.bf16.msra.mxu1 %v1891_v52 }
 0x2be   :  { %1707 = vmatprep.subr.bf16.mxu1 %v2036_v40 }
 0x373   :  { %v1654_v55 = vpop.f32.mrb[4].mxu1 }
 0x374   :  { %v1655_v57 = vpop.f32.mrb[5].mxu1 }
 0x375   :  { %v1656_v58 = vadd.f32 %v1655_v57, %v1654_v55  ;;  %v1657_v59 = vpop.f32.mrb[6].mxu1 }
 0x376   :  { %v1658_v60 = vpop.f32.mrb[7].mxu1 }
 0x377   :  { %v1036_v61 = vadd.f32 %v1656_v58, %v904_v56 }
 0x379   :  { %v1041_v62 = vmax.f32 %v1036_v61, 0.0 }
 0x37b   :  { %v1044_v63 = vrot.slane %v1041_v62, 4 }
 0x37d   :  { %v1045_v0 = vadd.f32 %v1044_v63, %v1041_v62  ;;  %v1185_v63 = vld [vmem:[#allocation7 + $0xc8] sm:$0x2] }
 0x37f   :  { %v1046_v1 = vrot.slane %v1045_v0, 2 }
 0x381   :  { %v1047_v2 = vadd.f32 %v1046_v1, %v1045_v0  ;;  %v1186_v0 = vunpack.c.l.bf16 %v1185_v63 }
 0x383   :  { %v1048_v3 = vrot.slane %v1047_v2, 1 }
 0x385   :  { %v1049_v4 = vadd.f32 %v1048_v3, %v1047_v2 }
 0x387   :  { %v1050_v5 = vmul.f32 0.125, %v1049_v4  ;;  %v1214_v4 = vrot.slane %v1186_v0, %v2132_v8 }
 0x389   :  { %v1051_v7 = vsub.f32 %v1041_v62, %v1050_v5 }
 0x38b   :  { %v1052_v11 = vmul.f32 %v1051_v7, %v1051_v7 }
 0x38d   :  { %v1053_v12 = vrot.slane %v1052_v11, 4 }
 0x38f   :  { %v1054_v13 = vadd.f32 %v1053_v12, %v1052_v11  ;;  %v1900_v12 = vld [vmem:[#allocation7 + $0x118] sm:$0xff]  }
 0x391   :  { %v1055_v14 = vrot.slane %v1054_v13, 2 }
 0x393   :  { %v1056_v15 = vadd.f32 %v1055_v14, %v1054_v13  ;;  %v1901_v13 = vld [vmem:[#allocation7 + $0x120] sm:$0xff]   ;;  %v1902_v14 = vld [vmem:[#allocation7 + $0x128] sm:$0xff]  }
 0x395   :  { %v1057_v16 = vrot.slane %v1056_v15, 1 }
 0x397   :  { %v1058_v17 = vadd.f32 %v1057_v16, %v1056_v15  ;;  %v1903_v15 = vld [vmem:[#allocation7 + $0x130] sm:$0xff]   ;;  %v1904_v16 = vld [vmem:[#allocation7 + $0x138] sm:$0xff]  }
 0x399   :  { %v1059_v18 = vmul.f32 0.125, %v1058_v17  ;;  %v1905_v17 = vld [vmem:[#allocation7 + $0x140] sm:$0xff]  }
 0x39b   :  { %v1060_v19 = vadd.f32 1e-05, %v1059_v18  ;;  %v1906_v18 = vld [vmem:[#allocation7 + $0x148] sm:$0xff]  }
 0x39d   :  { %1920 = vrsqrt.f32 %v1060_v19  ;;  %v1907_v19 = vld [vmem:[#allocation7 + $0x150] sm:$0xff]  }
 0x3a7   :  { %v1921_v21 = vpop.eup %1920 }
 0x3a8   :  { %v1062_v45 = vmul.f32 %v1921_v21, %v900_v54  ;;  %v1238_v21 = vrot.slane %v1234_v20, %v2109_v44 }
 0x3aa   :  { %v1066_v10 = vrot.slane %v1062_v45, %v2129_v6 }
 0x3ac   :  { %v1067_v24 = vmul.f32 %v1066_v10, %v1051_v7 }
 0x3ae   :  { %v1072_v42 = vadd.f32 %v1071_v22, %v1067_v24 }
 0x3b0   :  { %v1089_v9 = vpack.c.bf16 %v1072_v42, %v1072_v42 }
 0x3b2   :  { %1704 = vmatmul.mubr.bf16.vlgmr.msra.gmra.mrb[8].mxu1 %v1089_v9 }
 0x3b3   :  { %1723 = vmatprep.mubr.msk.bf16.mxu1 %vm2037_vm1, %v2036_v40  ;;  %1708 = vmatpush3.bf16.msra.mxu1 %v1892_v46 }
 0x3b4   :  { %1709 = vmatprep.subr.bf16.mxu1 %v2036_v40 }
 0x3b7   :  { %1710 = vmatpush3.bf16.msra.mxu1 %v1893_v43 }
 0x3b8   :  { %1711 = vmatprep.subr.bf16.mxu1 %v2036_v40 }
 0x3bb   :  { %1712 = vmatpush3.bf16.msra.mxu1 %v1894_v26 }
 0x3bc   :  { %1713 = vmatprep.subr.bf16.mxu1 %v2036_v40 }
 0x3bf   :  { %1714 = vmatpush3.bf16.msra.mxu1 %v1895_v27 }
 0x3c0   :  { %1715 = vmatprep.subr.bf16.mxu1 %v2036_v40 }
 0x3c3   :  { %1716 = vmatpush3.bf16.msra.mxu1 %v1896_v28 }
 0x3c4   :  { %1717 = vmatprep.subr.bf16.mxu1 %v2036_v40 }
 0x3c7   :  { %1718 = vmatpush3.bf16.msra.mxu1 %v1897_v30 }
 0x3c8   :  { %1719 = vmatprep.subr.bf16.mxu1 %v2036_v40 }
 0x3cb   :  { %1720 = vmatpush3.bf16.msra.mxu1 %v1898_v32 }
 0x3cc   :  { %1721 = vmatprep.subr.bf16.mxu1 %v2036_v40 }
 0x3cf   :  { %1722 = vmatpush3.bf16.msra.mxu1 %v1899_v33 }
 0x3d0   :  { %1727 = vmatprep.subr.bf16.mxu1 %v2036_v40 }
 0x485   :  { %v1178_v36 = vpop.f32.mrb[8].mxu1 }
 0x486   :  { %v1179_v23 = vadd.f32 %v1178_v36, %v1095_v35  ;;  %v1705_v31 = vpop.f32.mrb[9].mxu1 }
 0x487   :  { %v1181_v38 = vpop.f32.mrb[10].mxu1 }
 0x488   :  { %v1184_v29 = vmax.f32 %v1179_v23, 0.0  ;;  %v1706_v39 = vpop.f32.mrb[11].mxu1 }
 0x489   :  { %v1328_v39 = vld [vmem:[#allocation7 + $0x110] sm:$0x2] }
 0x48a   :  { %v1187_v25 = vrot.slane %v1184_v29, 4 }
 0x48c   :  { %v1188_v37 = vadd.f32 %v1187_v25, %v1184_v29  ;;  %v1329_v25 = vunpack.c.l.bf16 %v1328_v39 }
 0x48e   :  { %v1189_v48 = vrot.slane %v1188_v37, 2 }
 0x490   :  { %v1190_v49 = vadd.f32 %v1189_v48, %v1188_v37 }
 0x492   :  { %v1191_v50 = vrot.slane %v1190_v49, 1 }
 0x494   :  { %v1192_v51 = vadd.f32 %v1191_v50, %v1190_v49  ;;  %v1357_v50 = vrot.slane %v1329_v25, %v2132_v8 }
 0x496   :  { %v1193_v52 = vmul.f32 0.125, %v1192_v51 }
 0x498   :  { %v1194_v53 = vsub.f32 %v1184_v29, %v1193_v52 }
 0x49a   :  { %v1195_v54 = vmul.f32 %v1194_v53, %v1194_v53 }
 0x49c   :  { %v1196_v55 = vrot.slane %v1195_v54, 4 }
 0x49e   :  { %v1197_v56 = vadd.f32 %v1196_v55, %v1195_v54 }
 0x4a0   :  { %v1198_v57 = vrot.slane %v1197_v56, 2 }
 0x4a2   :  { %v1199_v58 = vadd.f32 %v1198_v57, %v1197_v56 }
 0x4a4   :  { %v1200_v59 = vrot.slane %v1199_v58, 1 }
 0x4a6   :  { %v1201_v60 = vadd.f32 %v1200_v59, %v1199_v58 }
 0x4a8   :  { %v1202_v61 = vmul.f32 0.125, %v1201_v60 }
 0x4aa   :  { %v1203_v62 = vadd.f32 1e-05, %v1202_v61 }
 0x4ac   :  { %1922 = vrsqrt.f32 %v1203_v62 }
 0x4b6   :  { %v1923_v1 = vpop.eup %1922 }
 0x4b7   :  { %v1205_v2 = vmul.f32 %v1923_v1, %v1091_v34 }
 0x4b9   :  { %v1209_v3 = vrot.slane %v1205_v2, %v2129_v6 }
 0x4bb   :  { %v1210_v5 = vmul.f32 %v1209_v3, %v1194_v53 }
 0x4bd   :  { %v1215_v7 = vadd.f32 %v1214_v4, %v1210_v5 }
 0x4bf   :  { %v1232_v11 = vpack.c.bf16 %v1215_v7, %v1215_v7 }
 0x4c1   :  { %1724 = vmatmul.mubr.bf16.vlgmr.msra.gmra.mrb[12].mxu1 %v1232_v11 }
 0x4c2   :  { %1743 = vmatprep.mubr.msk.bf16.mxu1 %vm2037_vm1, %v2036_v40  ;;  %1728 = vmatpush3.bf16.msra.mxu1 %v1900_v12 }
 0x4c3   :  { %1729 = vmatprep.subr.bf16.mxu1 %v2036_v40 }
 0x4c6   :  { %1730 = vmatpush3.bf16.msra.mxu1 %v1901_v13 }
 0x4c7   :  { %1731 = vmatprep.subr.bf16.mxu1 %v2036_v40 }
 0x4ca   :  { %1732 = vmatpush3.bf16.msra.mxu1 %v1902_v14  ;;  %v1464_v14 = vld [vmem:[#allocation7 + $0x158] sm:$0x1] }
 0x4cb   :  { %1733 = vmatprep.subr.bf16.mxu1 %v2036_v40 }
 0x4ce   :  { %1734 = vmatpush3.bf16.msra.mxu1 %v1903_v15  ;;  %v1465_v15 = vunpack.c.l.bf16 %v1464_v14 }
 0x4cf   :  { %1735 = vmatprep.subr.bf16.mxu1 %v2036_v40 }
 0x4d2   :  { %1736 = vmatpush3.bf16.msra.mxu1 %v1904_v16 }
 0x4d3   :  { %1737 = vmatprep.subr.bf16.mxu1 %v2036_v40 }
 0x4d6   :  { %1738 = vmatpush3.bf16.msra.mxu1 %v1905_v17 }
 0x4d7   :  { %1739 = vmatprep.subr.bf16.mxu1 %v2036_v40 }
 0x4da   :  { %1740 = vmatpush3.bf16.msra.mxu1 %v1906_v18 }
 0x4db   :  { %1741 = vmatprep.subr.bf16.mxu1 %v2036_v40 }
 0x4de   :  { %1742 = vmatpush3.bf16.msra.mxu1 %v1907_v19  ;;  %v1493_v19 = vrot.slane %v1465_v15, %v2129_v6 }
 0x594   :  { %v1321_v45 = vpop.f32.mrb[12].mxu1 }
 0x595   :  { %v1322_v10 = vadd.f32 %v1321_v45, %v1238_v21  ;;  %v1725_v22 = vpop.f32.mrb[13].mxu1 }
 0x596   :  { %v1324_v24 = vpop.f32.mrb[14].mxu1 }
 0x597   :  { %v1327_v42 = vmax.f32 %v1322_v10, 0.0  ;;  %v1726_v9 = vpop.f32.mrb[15].mxu1 }
 0x599   :  { %v1330_v46 = vrot.slane %v1327_v42, 4 }
 0x59b   :  { %v1331_v43 = vadd.f32 %v1330_v46, %v1327_v42 }
 0x59d   :  { %v1332_v26 = vrot.slane %v1331_v43, 2 }
 0x59f   :  { %v1333_v27 = vadd.f32 %v1332_v26, %v1331_v43 }
 0x5a1   :  { %v1334_v28 = vrot.slane %v1333_v27, 1 }
 0x5a3   :  { %v1335_v30 = vadd.f32 %v1334_v28, %v1333_v27 }
 0x5a5   :  { %v1336_v32 = vmul.f32 0.125, %v1335_v30 }
 0x5a7   :  { %v1337_v40 = vsub.f32 %v1327_v42, %v1336_v32 }
 0x5a9   :  { %v1338_v33 = vmul.f32 %v1337_v40, %v1337_v40 }
 0x5ab   :  { %v1339_v47 = vrot.slane %v1338_v33, 4 }
 0x5ad   :  { %v1340_v34 = vadd.f32 %v1339_v47, %v1338_v33 }
 0x5af   :  { %v1341_v35 = vrot.slane %v1340_v34, 2 }
 0x5b1   :  { %v1342_v36 = vadd.f32 %v1341_v35, %v1340_v34 }
 0x5b3   :  { %v1343_v23 = vrot.slane %v1342_v36, 1 }
 0x5b5   :  { %v1344_v31 = vadd.f32 %v1343_v23, %v1342_v36 }
 0x5b7   :  { %v1345_v38 = vmul.f32 0.125, %v1344_v31 }
 0x5b9   :  { %v1346_v29 = vadd.f32 1e-05, %v1345_v38 }
 0x5bb   :  { %1924 = vrsqrt.f32 %v1346_v29 }
 0x5c5   :  { %v1925_v37 = vpop.eup %1924 }
 0x5c6   :  { %v1348_v48 = vmul.f32 %v1925_v37, %v1234_v20 }
 0x5c8   :  { %v1352_v49 = vrot.slane %v1348_v48, %v2129_v6 }
 0x5ca   :  { %v1353_v51 = vmul.f32 %v1352_v49, %v1337_v40 }
 0x5cc   :  { %v1358_v52 = vadd.f32 %v1357_v50, %v1353_v51 }
 0x5ce   :  { %v1375_v53 = vpack.c.bf16 %v1358_v52, %v1358_v52 }
 0x5d0   :  { %1744 = vmatmul.mubr.bf16.vlgmr.msra.gmra.mrb[16].mxu1 %v1375_v53 }
 0x6a3   :  { %v1458_v54 = vpop.f32.mrb[16].mxu1 }
 0x6a4   :  { %v1466_v55 = vrot.slane %v1458_v54, 4  ;;  %v1745_v56 = vpop.f32.mrb[17].mxu1 }
 0x6a5   :  { %v1461_v57 = vpop.f32.mrb[18].mxu1 }
 0x6a6   :  { %v1467_v58 = vadd.f32 %v1466_v55, %v1458_v54  ;;  %v1746_v59 = vpop.f32.mrb[19].mxu1 }
 0x6a8   :  { %v1468_v60 = vrot.slane %v1467_v58, 2 }
 0x6aa   :  { %v1469_v61 = vadd.f32 %v1468_v60, %v1467_v58 }
 0x6ac   :  { %v1470_v62 = vrot.slane %v1469_v61, 1 }
 0x6ae   :  { %v1471_v63 = vadd.f32 %v1470_v62, %v1469_v61 }
 0x6b0   :  { %v1472_v0 = vmul.f32 0.125, %v1471_v63 }
 0x6b2   :  { %v1473_v1 = vsub.f32 %v1458_v54, %v1472_v0 }
 0x6b4   :  { %v1474_v2 = vmul.f32 %v1473_v1, %v1473_v1 }
 0x6b6   :  { %v1475_v3 = vrot.slane %v1474_v2, 4 }
 0x6b8   :  { %v1476_v4 = vadd.f32 %v1475_v3, %v1474_v2 }
 0x6ba   :  { %v1477_v8 = vrot.slane %v1476_v4, 2 }
 0x6bc   :  { %v1478_v5 = vadd.f32 %v1477_v8, %v1476_v4 }
 0x6be   :  { %v1479_v7 = vrot.slane %v1478_v5, 1 }
 0x6c0   :  { %v1480_v11 = vadd.f32 %v1479_v7, %v1478_v5 }
 0x6c2   :  { %v1481_v12 = vmul.f32 0.125, %v1480_v11 }
 0x6c4   :  { %v1482_v13 = vadd.f32 1e-05, %v1481_v12 }
 0x6c6   :  { %1926 = vrsqrt.f32 %v1482_v13 }
 0x6d0   :  { %v1927_v16 = vpop.eup %1926 }
 0x6d1   :  { %v1484_v17 = vmul.f32 %v1927_v16, %v1465_v15 }
 0x6d3   :  { %v1488_v18 = vrot.slane %v1484_v17, %v2109_v44 }
 0x6d5   :  { %v1489_v41 = vmul.f32 %v1488_v18, %v1473_v1 }
 0x6d7   :  { %v1494_v20 = vadd.f32 %v1493_v19, %v1489_v41 }
 0x6d9   :  { %1928 = vtanh.f32 %v1494_v20 }
 0x6e3   :  { %v1929_v21 = vpop.eup %1928 }
 0x6e4   :  { %v1497_v45 = vsel %vm1496_vm2, %v1929_v21, 0.0 }
 0x6e5   :  { %1498 = vadd.xlane.f32.xlu0 %v1497_v45 }
 0x772   :  { %v1499_v10 = vpop.xlane.xlu0 %1498 }
 0x773   :  { %v1501_v22 = vmul.f32 0.04761905, %v1499_v10 }
 0x775   :  { %v1502_v24 = vsub.f32 %v1929_v21, %v1501_v22 }
 0x777   :  { %v1503_v42 = vmul.f32 %v1502_v24, %v1502_v24 }
 0x779   :  { %v1504_v9 = vsel %vm1496_vm2, %v1503_v42, 0.0 }
 0x77a   :  { %1505 = vadd.xlane.f32.xlu0 %v1504_v9 }
 0x807   :  { %v1506_v46 = vpop.xlane.xlu0 %1505 }
 0x808   :  { %v1507_v43 = vmul.f32 0.04761905, %v1506_v46 }
 0x80a   :  { %v1508_v44 = vadd.f32 1e-05, %v1507_v43 }
 0x80c   :  { %1930 = vrsqrt.f32 %v1508_v44 }
 0x816   :  { %v1931_v6 = vpop.eup %1930 }
 0x817   :  { %v1510_v26 = vmul.f32 %v1931_v6, %v1502_v24 }
 0x819   :  { %1511 = vst.msk [vmem:[#allocation8] sm:$0xff] %vm1496_vm2, %v1510_v26 }
 0x81a   :  { %2009 = shalt.err (!%p2006_p0)
}
 0x81b   :  { %s2010_s8 = scalar_lea.hbm %s2225_s4, 128 }
 0x81c   :  { %p2011_p1 = scmp.ne.s32.totalorder %s2225_s4, %s2010_s8  ;;  %p2014_p2 = scmp.lt.u32.totalorder %s2010_s8, %s2225_s4 }
 0x81e   :  { %p2016_p3 = pnand %p2014_p2, %p2011_p1 }
 0x820   :  { %2019 = shalt.err (!%p2016_p3)
}
 0x821   :  { %1521 = dma.vmem_to_hbm [thread:$0]  %s1519_s3, 128, %s2225_s4, [#allocation4]  }
 0x822   :  { %2024 = dma.done.wait [#allocation4], 128  }
 0x823   :  { %2025 = vsyncadd [#allocation4], 4294967168 }
 0x824   :  { %1525 = vsyncpa [#allocation3], 1 }
 0x825   :  { %1526 = vsyncpa [#allocation6], 1 }
 0x826   :  { %1527 = vsyncpa [#allocation4], 1 }

</bundles_post_ra>
